<compile_context>
chip_gen: v7x
topology: tpu7x:2x2x1
jax: 0.10.0
libtpu: 0.0.40
codegen_flags: <defaults>
</compile_context>

<pallas_src>
import functools

import numpy as np
import jax
import jax.numpy as jnp
from jax.experimental import pallas as pl
from jax.experimental.pallas import tpu as pltpu

_EPS = 1e-5


# ----------------------------------------------------------------------------
# Kernel 1: generic fused conv layer  (GEMM + bias + InstanceNorm + activation)
#           layout: weights (OC, K), cols (K, HW), output (OC, HW)   [lane=HW]
# ----------------------------------------------------------------------------
def _conv_gemm_kernel(cols_ref, w_ref, b_ref, o_ref, *, apply_in, act):
    acc = jnp.dot(w_ref[...], cols_ref[...],
                  preferred_element_type=jnp.float32)            # (OC, HW) f32
    acc = acc + b_ref[...]                                       # (OC, 1) bcast
    if apply_in:  # InstanceNorm2d(affine=False): per-(sample, channel) stats
        mean = jnp.mean(acc, axis=1, keepdims=True)
        var = jnp.mean(jnp.square(acc - mean), axis=1, keepdims=True)
        acc = (acc - mean) * jax.lax.rsqrt(var + _EPS)
    if act == "relu":
        acc = jnp.maximum(acc, 0.0)
    elif act == "tanh":
        acc = jnp.tanh(acc)
    o_ref[...] = acc.astype(o_ref.dtype)


def fused_conv_gemm(cols, w_mat, bias, *, apply_in, act, out_dtype=jnp.bfloat16):
    """cols: (N, K, HW) bf16; w_mat: (OC, K) bf16; bias: (OC, 1) f32."""
    N, K, HW = cols.shape
    OC = w_mat.shape[0]
    return pl.pallas_call(
        functools.partial(_conv_gemm_kernel, apply_in=apply_in, act=act),
        out_shape=jax.ShapeDtypeStruct((N, OC, HW), out_dtype),
        grid=(N,),
        in_specs=[
            pl.BlockSpec((None, K, HW), lambda n: (n, 0, 0)),    # this sample
            pl.BlockSpec((OC, K), lambda n: (0, 0)),             # shared weight
            pl.BlockSpec((OC, 1), lambda n: (0, 0)),             # shared bias
        ],
        out_specs=pl.BlockSpec((None, OC, HW), lambda n: (n, 0, 0)),
        compiler_params=pltpu.CompilerParams(
            dimension_semantics=("parallel",)),
    )(cols, w_mat, bias)


# ----------------------------------------------------------------------------
# Kernel 2: fused residual trunk.  grid = (batch, 2*num_residuals) layers.
#   even layer:  cur = ReLU(IN(conv(cur))),  skip = old cur
#   odd  layer:  cur = skip + IN(conv(cur))
# conv = reflect-pad 3x3, done as 9 (shift-matmul, weight-matmul) MXU pairs.
# ----------------------------------------------------------------------------
def _trunk_kernel(x_ref, g_ref, w_ref, b_ref, o_ref, cur_ref, skip_ref):
    layer = pl.program_id(1)
    first_of_block = (layer % 2) == 0

    @pl.when(layer == 0)                       # load this sample's trunk input
    def _():
        cur_ref[...] = x_ref[...].astype(jnp.float32)

    @pl.when(first_of_block)                   # save the residual skip
    def _():
        skip_ref[...] = cur_ref[...]

    x_bf = cur_ref[...].astype(jnp.bfloat16)                     # (C, HW)
    acc = jnp.zeros(cur_ref.shape, jnp.float32)
    for tap in range(9):                       # 3x3 reflect conv, unrolled
        shifted = jnp.dot(x_bf, g_ref[tap],                      # (C,HW)x(HW,HW)
                          preferred_element_type=jnp.float32)
        acc = acc + jnp.dot(w_ref[tap], shifted.astype(jnp.bfloat16),
                            preferred_element_type=jnp.float32)  # (C,C)x(C,HW)
    acc = acc + b_ref[...]                                       # (C, 1)

    mean = jnp.mean(acc, axis=1, keepdims=True)                  # InstanceNorm
    var = jnp.mean(jnp.square(acc - mean), axis=1, keepdims=True)
    acc = (acc - mean) * jax.lax.rsqrt(var + _EPS)

    @pl.when(first_of_block)                   # first conv of block: ReLU
    def _():
        cur_ref[...] = jnp.maximum(acc, 0.0)

    @pl.when(jnp.logical_not(first_of_block))  # second conv: fused skip-add
    def _():
        cur_ref[...] = skip_ref[...] + acc

    @pl.when(layer == pl.num_programs(1) - 1)  # single HBM write per sample
    def _():
        o_ref[...] = cur_ref[...].astype(o_ref.dtype)


def residual_trunk(x, w_stack, b_stack, g_mats):
    """x: (N,C,H,W) bf16; w_stack: (L,9,C,C) bf16; b_stack: (L,C,1) f32;
       g_mats: (9, H*W, H*W) bf16 reflect-pad shift matrices."""
    N, C, H, W = x.shape
    HW = H * W
    L = w_stack.shape[0]
    y = pl.pallas_call(
        _trunk_kernel,
        out_shape=jax.ShapeDtypeStruct((N, C, HW), jnp.bfloat16),
        grid=(N, L),
        in_specs=[
            pl.BlockSpec((None, C, HW), lambda n, l: (n, 0, 0)),    # trunk input
            pl.BlockSpec((9, HW, HW), lambda n, l: (0, 0, 0)),      # shift mats
            pl.BlockSpec((None, 9, C, C), lambda n, l: (l, 0, 0, 0)),  # layer w
            pl.BlockSpec((None, C, 1), lambda n, l: (l, 0, 0)),        # layer b
        ],
        out_specs=pl.BlockSpec((None, C, HW), lambda n, l: (n, 0, 0)),
        scratch_shapes=[pltpu.VMEM((C, HW), jnp.float32),   # running activation
                        pltpu.VMEM((C, HW), jnp.float32)],  # residual skip
        compiler_params=pltpu.CompilerParams(
            dimension_semantics=("parallel", "arbitrary")),
    )(x.reshape(N, C, HW), g_mats, w_stack, b_stack)
    return y.reshape(N, C, H, W)


# ----------------------------------------------------------------------------
# Convolution glue (NCHW, channel-major im2col + fused Pallas GEMM)
# ----------------------------------------------------------------------------
def _im2col_nchw(x_pad, ksz, stride):
    """x_pad: (N,C,Hp,Wp) -> cols (N, ksz*ksz*C, OH*OW); K ordered (kh,kw,c)."""
    N, C, Hp, Wp = x_pad.shape
    OH = (Hp - ksz) // stride + 1
    OW = (Wp - ksz) // stride + 1
    taps = []
    for kh in range(ksz):
        for kw in range(ksz):
            taps.append(x_pad[:, :, kh:kh + (OH - 1) * stride + 1:stride,
                                    kw:kw + (OW - 1) * stride + 1:stride])
    cols = jnp.concatenate(taps, axis=1)                 # (N, K, OH, OW)
    return cols.reshape(N, ksz * ksz * C, OH * OW), OH, OW


def conv_block(x, layer, *, ksz, stride, padding, pad_mode="reflect",
               apply_in, act, out_dtype=jnp.bfloat16):
    """x: (N,C,H,W); layer = (w_mat (OC,K) bf16, bias (OC,1) f32)."""
    w_mat, bias = layer
    N = x.shape[0]
    OC = w_mat.shape[0]
    if padding > 0:
        x = jnp.pad(x, ((0, 0), (0, 0), (padding, padding), (padding, padding)),
                    mode=pad_mode)
    cols, OH, OW = _im2col_nchw(x, ksz, stride)
    y = fused_conv_gemm(cols, w_mat, bias, apply_in=apply_in, act=act,
                        out_dtype=out_dtype)
    return y.reshape(N, OC, OH, OW)


def conv_transpose_block(x, layer, *, ksz, stride, padding, output_padding,
                         apply_in, act, out_dtype=jnp.bfloat16):
    """ConvTranspose2d lowered as zero-dilated input + flipped-weight conv."""
    # TODO(synk): sub-pixel decomposition would avoid the 75%-zero dilated taps.
    N, C, H, W = x.shape
    Hd, Wd = (H - 1) * stride + 1, (W - 1) * stride + 1
    xd = jnp.zeros((N, C, Hd, Wd), x.dtype).at[:, :, ::stride, ::stride].set(x)
    lo = ksz - 1 - padding
    hi = ksz - 1 - padding + output_padding
    xd = jnp.pad(xd, ((0, 0), (0, 0), (lo, hi), (lo, hi)))
    return conv_block(xd, layer, ksz=ksz, stride=1, padding=0,
                      apply_in=apply_in, act=act, out_dtype=out_dtype)


# ----------------------------------------------------------------------------
# Parameters: raw PyTorch-layout init + one-time packing into kernel layouts
# ----------------------------------------------------------------------------
def init_generator_params(key, features=8, num_residuals=9):
    def conv_p(k, oc, ic, ksz):
        k1, k2 = jax.random.split(k)
        return (jax.random.normal(k1, (oc, ic, ksz, ksz), jnp.float32) * 0.05,
                jax.random.normal(k2, (oc,), jnp.float32) * 0.05)

    def convT_p(k, ic, oc, ksz):
        k1, k2 = jax.random.split(k)
        return (jax.random.normal(k1, (ic, oc, ksz, ksz), jnp.float32) * 0.05,
                jax.random.normal(k2, (oc,), jnp.float32) * 0.05)

    keys = jax.random.split(key, 6 + 2 * num_residuals)
    F = features
    return {
        "initial": conv_p(keys[0], F, 3, 7),
        "down1": conv_p(keys[1], 2 * F, F, 3),
        "down2": conv_p(keys[2], 4 * F, 2 * F, 3),
        "res": [conv_p(keys[3 + 2 * i], 4 * F, 4 * F, 3)
                + conv_p(keys[4 + 2 * i], 4 * F, 4 * F, 3)
                for i in range(num_residuals)],
        "up1": convT_p(keys[3 + 2 * num_residuals], 4 * F, 2 * F, 3),
        "up2": convT_p(keys[4 + 2 * num_residuals], 2 * F, F, 3),
        "last": conv_p(keys[5 + 2 * num_residuals], 3, F, 7),
    }


def _reflect_shift_mats(h, w):
    """(9, h*w, h*w) 0/1 matrices G_t with (x @ G_t)[:, p] = x[:, src_t(p)]
       for a 3x3 / stride-1 / reflect-pad-1 conv tap t = kh*3 + kw."""
    def refl(i, n):
        j = i - 1
        if j < 0:
            j = -j
        elif j >= n:
            j = 2 * (n - 1) - j
        return j
    g = np.zeros((9, h * w, h * w), np.float32)
    for kh in range(3):
        for kw in range(3):
            t = kh * 3 + kw
            for oh in range(h):
                for ow in range(w):
                    q = refl(oh + kh, h) * w + refl(ow + kw, w)
                    g[t, q, oh * w + ow] = 1.0
    return g


def pack_generator_params(params, num_residuals=9, image_size=16):
    """One-time packing (outside the per-step trace): GEMM-layout bf16 weights,
       f32 (OC,1) biases, stacked trunk weights, reflect-shift matrices."""
    def pack_conv(w, b):
        oc, c, kh, kw = w.shape
        w_mat = jnp.transpose(w, (0, 2, 3, 1)).reshape(oc, kh * kw * c)
        return w_mat.astype(jnp.bfloat16), b.reshape(oc, 1).astype(jnp.float32)

    def pack_convT(w, b):
        # (IC, OC, KH, KW) -> equivalent forward-conv weight (OC, IC, KH, KW)
        return pack_conv(jnp.transpose(jnp.flip(w, axis=(2, 3)), (1, 0, 2, 3)), b)

    trunk_w, trunk_b = [], []
    for i in range(num_residuals):
        w1, b1, w2, b2 = params["res"][i]
        for w, b in ((w1, b1), (w2, b2)):
            oc, c = w.shape[0], w.shape[1]
            trunk_w.append(jnp.transpose(w, (2, 3, 0, 1)).reshape(9, oc, c))
            trunk_b.append(b.reshape(oc, 1))

    res_hw = image_size // 4             # spatial size at residual resolution
    return {
        "initial": pack_conv(*params["initial"]),
        "down1": pack_conv(*params["down1"]),
        "down2": pack_conv(*params["down2"]),
        "trunk_w": jnp.stack(trunk_w).astype(jnp.bfloat16),     # (2R, 9, C, C)
        "trunk_b": jnp.stack(trunk_b).astype(jnp.float32),      # (2R, C, 1)
        "shift_g": jnp.asarray(_reflect_shift_mats(res_hw, res_hw), jnp.bfloat16),
        "up1": pack_convT(*params["up1"]),
        "up2": pack_convT(*params["up2"]),
        "last": pack_conv(*params["last"]),
    }


# ----------------------------------------------------------------------------
# Generator forward (7 pallas_calls)
# ----------------------------------------------------------------------------
def generator_forward(packed, x_nchw):
    """x_nchw: (N, 3, H, W) f32 -> (N, 3, H, W) f32 in [-1, 1]."""
    x = x_nchw.astype(jnp.bfloat16)
    # initial: Conv 7x7 s1 p3 (reflect) + ReLU
    x = conv_block(x, packed["initial"], ksz=7, stride=1, padding=3,
                   apply_in=False, act="relu")
    # down: Conv 3x3 s2 p1 (reflect) + IN + ReLU
    x = conv_block(x, packed["down1"], ksz=3, stride=2, padding=1,
                   apply_in=True, act="relu")
    x = conv_block(x, packed["down2"], ksz=3, stride=2, padding=1,
                   apply_in=True, act="relu")
    # residual trunk: 9 x [conv+IN+ReLU, conv+IN, skip] fused in ONE kernel
    x = residual_trunk(x, packed["trunk_w"], packed["trunk_b"], packed["shift_g"])
    # up: ConvTranspose 3x3 s2 p1 op1 + IN + ReLU
    x = conv_transpose_block(x, packed["up1"], ksz=3, stride=2, padding=1,
                             output_padding=1, apply_in=True, act="relu")
    x = conv_transpose_block(x, packed["up2"], ksz=3, stride=2, padding=1,
                             output_padding=1, apply_in=True, act="relu")
    # last: Conv 7x7 s1 p3 (reflect) + Tanh
    x = conv_block(x, packed["last"], ksz=7, stride=1, padding=3,
                   apply_in=False, act="tanh", out_dtype=jnp.float32)
    return x


# ----------------------------------------------------------------------------
# Pure-JAX reference (same bf16 quantization points) for a structural check
# ----------------------------------------------------------------------------
def generator_reference(params, x, num_residuals=9):
    bf = jnp.bfloat16

    def conv(x, w, b, stride, padding, mode, apply_in, act):
        if padding > 0:
            x = jnp.pad(x, ((0, 0), (0, 0), (padding, padding),
                            (padding, padding)), mode=mode)
        y = jax.lax.conv_general_dilated(
            x.astype(bf), w.astype(bf), (stride, stride), "VALID",
            dimension_numbers=("NCHW", "OIHW", "NCHW"),
            preferred_element_type=jnp.float32)
        y = y + b.reshape(1, -1, 1, 1)
        if apply_in:
            mean = jnp.mean(y, axis=(2, 3), keepdims=True)
            var = jnp.mean(jnp.square(y - mean), axis=(2, 3), keepdims=True)
            y = (y - mean) * jax.lax.rsqrt(var + _EPS)
        if act == "relu":
            y = jnp.maximum(y, 0.0)
        elif act == "tanh":
            y = jnp.tanh(y)
        return y

    def convT(x, w, b, stride, padding, output_padding, apply_in, act):
        w_conv = jnp.transpose(jnp.flip(w, axis=(2, 3)), (1, 0, 2, 3))
        n, c, h, wd = x.shape
        k = w.shape[2]
        hd, wdd = (h - 1) * stride + 1, (wd - 1) * stride + 1
        xd = jnp.zeros((n, c, hd, wdd), x.dtype).at[:, :, ::stride, ::stride].set(x)
        lo, hi = k - 1 - padding, k - 1 - padding + output_padding
        xd = jnp.pad(xd, ((0, 0), (0, 0), (lo, hi), (lo, hi)))
        return conv(xd, w_conv, b, 1, 0, "constant", apply_in, act)

    x = x.astype(bf)
    x = conv(x, *params["initial"], 1, 3, "reflect", False, "relu").astype(bf)
    x = conv(x, *params["down1"], 2, 1, "reflect", True, "relu").astype(bf)
    x = conv(x, *params["down2"], 2, 1, "reflect", True, "relu").astype(bf)
    h = x.astype(jnp.float32)
    for i in range(num_residuals):
        w1, b1, w2, b2 = params["res"][i]
        y = conv(h.astype(bf), w1, b1, 1, 1, "reflect", True, "relu")
        y = conv(y.astype(bf), w2, b2, 1, 1, "reflect", True, "none")
        h = h + y
    x = h.astype(bf)
    x = convT(x, *params["up1"], 2, 1, 1, True, "relu").astype(bf)
    x = convT(x, *params["up2"], 2, 1, 1, True, "relu").astype(bf)
    return conv(x, *params["last"], 1, 3, "reflect", False, "tanh")


if __name__ == "__main__":
    FEATURES = 8          # stand-in for config.FEATURES
    NUM_RESIDUALS = 9
    IMG = 16

    key = jax.random.PRNGKey(0)
    k_params, k_x = jax.random.split(key)
    params = init_generator_params(k_params, features=FEATURES,
                                   num_residuals=NUM_RESIDUALS)
    packed = pack_generator_params(params, num_residuals=NUM_RESIDUALS,
                                   image_size=IMG)
    x = jax.random.normal(k_x, (2, 3, IMG, IMG), jnp.float32)     # NCHW

    fwd = jax.jit(generator_forward)
    out = jax.block_until_ready(fwd(packed, x))

    assert out.shape == (2, 3, IMG, IMG), out.shape
    assert out.dtype == jnp.float32
    assert bool(jnp.all(jnp.isfinite(out)))
    assert bool(jnp.all(jnp.abs(out) <= 1.0))        # tanh output range

    # Structural cross-check against a pure-JAX reference with the same bf16
    # quantization points (loose tolerance for rounding-order differences).
    ref = jax.jit(functools.partial(generator_reference,
                                    num_residuals=NUM_RESIDUALS))(params, x)
    err = float(jnp.max(jnp.abs(out - ref.astype(jnp.float32))))
    assert err < 0.1, f"max|out-ref|={err}"

    print("KERNEL_OK")
</pallas_src>

<mosaic_0001>
module attributes {stable_mosaic.version = 11 : i64} {
  func.func @_conv_gemm_kernel(%arg0: i32, %arg1: memref<1x147x256xbf16, #tpu.memory_space<vmem>>, %arg2: memref<8x147xbf16, #tpu.memory_space<vmem>>, %arg3: memref<8x1xf32, #tpu.memory_space<vmem>>, %arg4: memref<1x8x256xbf16, #tpu.memory_space<vmem>>) attributes {dimension_semantics = [#tpu.dimension_semantics<parallel>], iteration_bounds = array<i64: 2>, scalar_prefetch = 0 : i64, scratch_operands = 0 : i64, tpu.core_type = #tpu.core_type<tc>, window_params = [{transform_indices = @transform_0, window_bounds = array<i64: 1, 147, 256>}, {pipeline_mode = #tpu.pipeline_mode<synchronous>, transform_indices = @transform_1, window_bounds = array<i64: 8, 147>}, {pipeline_mode = #tpu.pipeline_mode<synchronous>, transform_indices = @transform_2, window_bounds = array<i64: 8, 1>}, {transform_indices = @transform_3, window_bounds = array<i64: 1, 8, 256>}]} {
    %c0 = arith.constant 0 : index
    %c0_0 = arith.constant 0 : index
    %0 = vector.load %arg2[%c0, %c0_0] : memref<8x147xbf16, #tpu.memory_space<vmem>>, vector<8x147xbf16>
    %c0_1 = arith.constant 0 : index
    %c0_2 = arith.constant 0 : index
    %c0_3 = arith.constant 0 : index
    %1 = vector.load %arg1[%c0_1, %c0_2, %c0_3] : memref<1x147x256xbf16, #tpu.memory_space<vmem>>, vector<1x147x256xbf16>
    %2 = vector.shape_cast %1 : vector<1x147x256xbf16> to vector<147x256xbf16>
    %cst = arith.constant dense<0.000000e+00> : vector<8x256xf32>
    %3 = tpu.matmul %0, %2, %cst {dimension_numbers = #tpu.dot_dimension_numbers<[1], [0], [0], [1], [0, 0, 1, 1], [], []>} : vector<8x147xbf16>, vector<147x256xbf16>, vector<8x256xf32> -> vector<8x256xf32>
    %c0_4 = arith.constant 0 : index
    %c0_5 = arith.constant 0 : index
    %4 = vector.load %arg3[%c0_4, %c0_5] : memref<8x1xf32, #tpu.memory_space<vmem>>, vector<8x1xf32>
    %5 = vector.broadcast %4 : vector<8x1xf32> to vector<8x256xf32>
    %6 = arith.addf %3, %5 : vector<8x256xf32>
    %cst_6 = arith.constant 0.000000e+00 : f32
    %7 = vector.broadcast %cst_6 : f32 to vector<8x256xf32>
    %8 = arith.maximumf %6, %7 : vector<8x256xf32>
    %9 = arith.truncf %8 : vector<8x256xf32> to vector<8x256xbf16>
    %c0_7 = arith.constant 0 : index
    %c0_8 = arith.constant 0 : index
    %c0_9 = arith.constant 0 : index
    %10 = vector.load %arg4[%c0_7, %c0_8, %c0_9] : memref<1x8x256xbf16, #tpu.memory_space<vmem>>, vector<1x8x256xbf16>
    %11 = vector.shape_cast %10 : vector<1x8x256xbf16> to vector<8x256xbf16>
    %12 = vector.shape_cast %9 : vector<8x256xbf16> to vector<1x8x256xbf16>
    tpu.vector_store %arg4[%c0_7, %c0_8, %c0_9], %12 {strides = array<i32>} : memref<1x8x256xbf16, #tpu.memory_space<vmem>>, vector<1x8x256xbf16>,
    return
  }
  func.func @transform_0(%arg0: i32) -> (i32, i32, i32) {
    %c0_i32 = arith.constant 0 : i32
    %c0_i32_0 = arith.constant 0 : i32
    %c0_i32_1 = arith.constant 0 : i32
    return %arg0, %c0_i32, %c0_i32_0 : i32, i32, i32
  }
  func.func @transform_1(%arg0: i32) -> (i32, i32) {
    %c0_i32 = arith.constant 0 : i32
    %c0_i32_0 = arith.constant 0 : i32
    %c0_i32_1 = arith.constant 0 : i32
    return %c0_i32, %c0_i32_0 : i32, i32
  }
  func.func @transform_2(%arg0: i32) -> (i32, i32) {
    %c0_i32 = arith.constant 0 : i32
    %c0_i32_0 = arith.constant 0 : i32
    %c0_i32_1 = arith.constant 0 : i32
    return %c0_i32, %c0_i32_0 : i32, i32
  }
  func.func @transform_3(%arg0: i32) -> (i32, i32, i32) {
    %c0_i32 = arith.constant 0 : i32
    %c0_i32_0 = arith.constant 0 : i32
    %c0_i32_1 = arith.constant 0 : i32
    return %arg0, %c0_i32, %c0_i32_0 : i32, i32, i32
  }
}

module attributes {stable_mosaic.version = 11 : i64} {
  func.func @_conv_gemm_kernel(%arg0: i32, %arg1: memref<1x72x64xbf16, #tpu.memory_space<vmem>>, %arg2: memref<16x72xbf16, #tpu.memory_space<vmem>>, %arg3: memref<16x1xf32, #tpu.memory_space<vmem>>, %arg4: memref<1x16x64xbf16, #tpu.memory_space<vmem>>) attributes {dimension_semantics = [#tpu.dimension_semantics<parallel>], iteration_bounds = array<i64: 2>, scalar_prefetch = 0 : i64, scratch_operands = 0 : i64, tpu.core_type = #tpu.core_type<tc>, window_params = [{transform_indices = @transform_0, window_bounds = array<i64: 1, 72, 64>}, {pipeline_mode = #tpu.pipeline_mode<synchronous>, transform_indices = @transform_1, window_bounds = array<i64: 16, 72>}, {pipeline_mode = #tpu.pipeline_mode<synchronous>, transform_indices = @transform_2, window_bounds = array<i64: 16, 1>}, {transform_indices = @transform_3, window_bounds = array<i64: 1, 16, 64>}]} {
    %c0 = arith.constant 0 : index
    %c0_0 = arith.constant 0 : index
    %0 = vector.load %arg2[%c0, %c0_0] : memref<16x72xbf16, #tpu.memory_space<vmem>>, vector<16x72xbf16>
    %c0_1 = arith.constant 0 : index
    %c0_2 = arith.constant 0 : index
    %c0_3 = arith.constant 0 : index
    %1 = vector.load %arg1[%c0_1, %c0_2, %c0_3] : memref<1x72x64xbf16, #tpu.memory_space<vmem>>, vector<1x72x64xbf16>
    %2 = vector.shape_cast %1 : vector<1x72x64xbf16> to vector<72x64xbf16>
    %cst = arith.constant dense<0.000000e+00> : vector<16x64xf32>
    %3 = tpu.matmul %0, %2, %cst {dimension_numbers = #tpu.dot_dimension_numbers<[1], [0], [0], [1], [0, 0, 1, 1], [], []>} : vector<16x72xbf16>, vector<72x64xbf16>, vector<16x64xf32> -> vector<16x64xf32>
    %c0_4 = arith.constant 0 : index
    %c0_5 = arith.constant 0 : index
    %4 = vector.load %arg3[%c0_4, %c0_5] : memref<16x1xf32, #tpu.memory_space<vmem>>, vector<16x1xf32>
    %5 = vector.broadcast %4 : vector<16x1xf32> to vector<16x64xf32>
    %6 = arith.addf %3, %5 : vector<16x64xf32>
    %cst_6 = arith.constant dense<0.000000e+00> : vector<16xf32>
    %7 = vector.multi_reduction <add>, %6, %cst_6 [1] : vector<16x64xf32> to vector<16xf32>
    %8 = vector.shape_cast %7 : vector<16xf32> to vector<16x1xf32>
    %cst_7 = arith.constant 6.400000e+01 : f32
    %9 = vector.broadcast %cst_7 : f32 to vector<16x1xf32>
    %10 = arith.divf %8, %9 : vector<16x1xf32>
    %11 = vector.broadcast %10 : vector<16x1xf32> to vector<16x64xf32>
    %12 = arith.subf %6, %11 : vector<16x64xf32>
    %13 = arith.mulf %12, %12 : vector<16x64xf32>
    %cst_8 = arith.constant dense<0.000000e+00> : vector<16xf32>
    %14 = vector.multi_reduction <add>, %13, %cst_8 [1] : vector<16x64xf32> to vector<16xf32>
    %15 = vector.shape_cast %14 : vector<16xf32> to vector<16x1xf32>
    %cst_9 = arith.constant 6.400000e+01 : f32
    %16 = vector.broadcast %cst_9 : f32 to vector<16x1xf32>
    %17 = arith.divf %15, %16 : vector<16x1xf32>
    %18 = vector.broadcast %10 : vector<16x1xf32> to vector<16x64xf32>
    %19 = arith.subf %6, %18 : vector<16x64xf32>
    %cst_10 = arith.constant 9.99999974E-6 : f32
    %20 = vector.broadcast %cst_10 : f32 to vector<16x1xf32>
    %21 = arith.addf %17, %20 : vector<16x1xf32>
    %22 = math.rsqrt %21 : vector<16x1xf32>
    %23 = vector.broadcast %22 : vector<16x1xf32> to vector<16x64xf32>
    %24 = arith.mulf %19, %23 : vector<16x64xf32>
    %cst_11 = arith.constant 0.000000e+00 : f32
    %25 = vector.broadcast %cst_11 : f32 to vector<16x64xf32>
    %26 = arith.maximumf %24, %25 : vector<16x64xf32>
    %27 = arith.truncf %26 : vector<16x64xf32> to vector<16x64xbf16>
    %c0_12 = arith.constant 0 : index
    %c0_13 = arith.constant 0 : index
    %c0_14 = arith.constant 0 : index
    %28 = vector.load %arg4[%c0_12, %c0_13, %c0_14] : memref<1x16x64xbf16, #tpu.memory_space<vmem>>, vector<1x16x64xbf16>
    %29 = vector.shape_cast %28 : vector<1x16x64xbf16> to vector<16x64xbf16>
    %30 = vector.shape_cast %27 : vector<16x64xbf16> to vector<1x16x64xbf16>
    tpu.vector_store %arg4[%c0_12, %c0_13, %c0_14], %30 {strides = array<i32>} : memref<1x16x64xbf16, #tpu.memory_space<vmem>>, vector<1x16x64xbf16>,
    return
  }
  func.func @transform_0(%arg0: i32) -> (i32, i32, i32) {
    %c0_i32 = arith.constant 0 : i32
    %c0_i32_0 = arith.constant 0 : i32
    %c0_i32_1 = arith.constant 0 : i32
    return %arg0, %c0_i32, %c0_i32_0 : i32, i32, i32
  }
  func.func @transform_1(%arg0: i32) -> (i32, i32) {
    %c0_i32 = arith.constant 0 : i32
    %c0_i32_0 = arith.constant 0 : i32
    %c0_i32_1 = arith.constant 0 : i32
    return %c0_i32, %c0_i32_0 : i32, i32
  }
  func.func @transform_2(%arg0: i32) -> (i32, i32) {
    %c0_i32 = arith.constant 0 : i32
    %c0_i32_0 = arith.constant 0 : i32
    %c0_i32_1 = arith.constant 0 : i32
    return %c0_i32, %c0_i32_0 : i32, i32
  }
  func.func @transform_3(%arg0: i32) -> (i32, i32, i32) {
    %c0_i32 = arith.constant 0 : i32
    %c0_i32_0 = arith.constant 0 : i32
    %c0_i32_1 = arith.constant 0 : i32
    return %arg0, %c0_i32, %c0_i32_0 : i32, i32, i32
  }
}

module attributes {stable_mosaic.version = 11 : i64} {
  func.func @_conv_gemm_kernel(%arg0: i32, %arg1: memref<1x144x16xbf16, #tpu.memory_space<vmem>>, %arg2: memref<32x144xbf16, #tpu.memory_space<vmem>>, %arg3: memref<32x1xf32, #tpu.memory_space<vmem>>, %arg4: memref<1x32x16xbf16, #tpu.memory_space<vmem>>) attributes {dimension_semantics = [#tpu.dimension_semantics<parallel>], iteration_bounds = array<i64: 2>, scalar_prefetch = 0 : i64, scratch_operands = 0 : i64, tpu.core_type = #tpu.core_type<tc>, window_params = [{transform_indices = @transform_0, window_bounds = array<i64: 1, 144, 16>}, {pipeline_mode = #tpu.pipeline_mode<synchronous>, transform_indices = @transform_1, window_bounds = array<i64: 32, 144>}, {pipeline_mode = #tpu.pipeline_mode<synchronous>, transform_indices = @transform_2, window_bounds = array<i64: 32, 1>}, {transform_indices = @transform_3, window_bounds = array<i64: 1, 32, 16>}]} {
    %c0 = arith.constant 0 : index
    %c0_0 = arith.constant 0 : index
    %0 = vector.load %arg2[%c0, %c0_0] : memref<32x144xbf16, #tpu.memory_space<vmem>>, vector<32x144xbf16>
    %c0_1 = arith.constant 0 : index
    %c0_2 = arith.constant 0 : index
    %c0_3 = arith.constant 0 : index
    %1 = vector.load %arg1[%c0_1, %c0_2, %c0_3] : memref<1x144x16xbf16, #tpu.memory_space<vmem>>, vector<1x144x16xbf16>
    %2 = vector.shape_cast %1 : vector<1x144x16xbf16> to vector<144x16xbf16>
    %cst = arith.constant dense<0.000000e+00> : vector<32x16xf32>
    %3 = tpu.matmul %0, %2, %cst {dimension_numbers = #tpu.dot_dimension_numbers<[1], [0], [0], [1], [0, 0, 1, 1], [], []>} : vector<32x144xbf16>, vector<144x16xbf16>, vector<32x16xf32> -> vector<32x16xf32>
    %c0_4 = arith.constant 0 : index
    %c0_5 = arith.constant 0 : index
    %4 = vector.load %arg3[%c0_4, %c0_5] : memref<32x1xf32, #tpu.memory_space<vmem>>, vector<32x1xf32>
    %5 = vector.broadcast %4 : vector<32x1xf32> to vector<32x16xf32>
    %6 = arith.addf %3, %5 : vector<32x16xf32>
    %cst_6 = arith.constant dense<0.000000e+00> : vector<32xf32>
    %7 = vector.multi_reduction <add>, %6, %cst_6 [1] : vector<32x16xf32> to vector<32xf32>
    %8 = vector.shape_cast %7 : vector<32xf32> to vector<32x1xf32>
    %cst_7 = arith.constant 1.600000e+01 : f32
    %9 = vector.broadcast %cst_7 : f32 to vector<32x1xf32>
    %10 = arith.divf %8, %9 : vector<32x1xf32>
    %11 = vector.broadcast %10 : vector<32x1xf32> to vector<32x16xf32>
    %12 = arith.subf %6, %11 : vector<32x16xf32>
    %13 = arith.mulf %12, %12 : vector<32x16xf32>
    %cst_8 = arith.constant dense<0.000000e+00> : vector<32xf32>
    %14 = vector.multi_reduction <add>, %13, %cst_8 [1] : vector<32x16xf32> to vector<32xf32>
    %15 = vector.shape_cast %14 : vector<32xf32> to vector<32x1xf32>
    %cst_9 = arith.constant 1.600000e+01 : f32
    %16 = vector.broadcast %cst_9 : f32 to vector<32x1xf32>
    %17 = arith.divf %15, %16 : vector<32x1xf32>
    %18 = vector.broadcast %10 : vector<32x1xf32> to vector<32x16xf32>
    %19 = arith.subf %6, %18 : vector<32x16xf32>
    %cst_10 = arith.constant 9.99999974E-6 : f32
    %20 = vector.broadcast %cst_10 : f32 to vector<32x1xf32>
    %21 = arith.addf %17, %20 : vector<32x1xf32>
    %22 = math.rsqrt %21 : vector<32x1xf32>
    %23 = vector.broadcast %22 : vector<32x1xf32> to vector<32x16xf32>
    %24 = arith.mulf %19, %23 : vector<32x16xf32>
    %cst_11 = arith.constant 0.000000e+00 : f32
    %25 = vector.broadcast %cst_11 : f32 to vector<32x16xf32>
    %26 = arith.maximumf %24, %25 : vector<32x16xf32>
    %27 = arith.truncf %26 : vector<32x16xf32> to vector<32x16xbf16>
    %c0_12 = arith.constant 0 : index
    %c0_13 = arith.constant 0 : index
    %c0_14 = arith.constant 0 : index
    %28 = vector.load %arg4[%c0_12, %c0_13, %c0_14] : memref<1x32x16xbf16, #tpu.memory_space<vmem>>, vector<1x32x16xbf16>
    %29 = vector.shape_cast %28 : vector<1x32x16xbf16> to vector<32x16xbf16>
    %30 = vector.shape_cast %27 : vector<32x16xbf16> to vector<1x32x16xbf16>
    tpu.vector_store %arg4[%c0_12, %c0_13, %c0_14], %30 {strides = array<i32>} : memref<1x32x16xbf16, #tpu.memory_space<vmem>>, vector<1x32x16xbf16>,
    return
  }
  func.func @transform_0(%arg0: i32) -> (i32, i32, i32) {
    %c0_i32 = arith.constant 0 : i32
    %c0_i32_0 = arith.constant 0 : i32
    %c0_i32_1 = arith.constant 0 : i32
    return %arg0, %c0_i32, %c0_i32_0 : i32, i32, i32
  }
  func.func @transform_1(%arg0: i32) -> (i32, i32) {
    %c0_i32 = arith.constant 0 : i32
    %c0_i32_0 = arith.constant 0 : i32
    %c0_i32_1 = arith.constant 0 : i32
    return %c0_i32, %c0_i32_0 : i32, i32
  }
  func.func @transform_2(%arg0: i32) -> (i32, i32) {
    %c0_i32 = arith.constant 0 : i32
    %c0_i32_0 = arith.constant 0 : i32
    %c0_i32_1 = arith.constant 0 : i32
    return %c0_i32, %c0_i32_0 : i32, i32
  }
  func.func @transform_3(%arg0: i32) -> (i32, i32, i32) {
    %c0_i32 = arith.constant 0 : i32
    %c0_i32_0 = arith.constant 0 : i32
    %c0_i32_1 = arith.constant 0 : i32
    return %arg0, %c0_i32, %c0_i32_0 : i32, i32, i32
  }
}

module attributes {stable_mosaic.version = 11 : i64} {
  func.func @_trunk_kernel(%arg0: i32, %arg1: i32, %arg2: memref<1x32x16xbf16, #tpu.memory_space<vmem>>, %arg3: memref<9x16x16xbf16, #tpu.memory_space<vmem>>, %arg4: memref<1x9x32x32xbf16, #tpu.memory_space<vmem>>, %arg5: memref<1x32x1xf32, #tpu.memory_space<vmem>>, %arg6: memref<1x32x16xbf16, #tpu.memory_space<vmem>>, %arg7: memref<32x16xf32, #tpu.memory_space<vmem>>, %arg8: memref<32x16xf32, #tpu.memory_space<vmem>>) attributes {dimension_semantics = [#tpu.dimension_semantics<parallel>, #tpu.dimension_semantics<arbitrary>], iteration_bounds = array<i64: 2, 18>, scalar_prefetch = 0 : i64, scratch_operands = 2 : i64, tpu.core_type = #tpu.core_type<tc>, window_params = [{transform_indices = @transform_0, window_bounds = array<i64: 1, 32, 16>}, {pipeline_mode = #tpu.pipeline_mode<synchronous>, transform_indices = @transform_1, window_bounds = array<i64: 9, 16, 16>}, {transform_indices = @transform_2, window_bounds = array<i64: 1, 9, 32, 32>}, {transform_indices = @transform_3, window_bounds = array<i64: 1, 32, 1>}, {transform_indices = @transform_4, window_bounds = array<i64: 1, 32, 16>}]} {
    %c2_i32 = arith.constant 2 : i32
    %c0_i32 = arith.constant 0 : i32
    %0 = arith.cmpi eq, %c2_i32, %c0_i32 : i32
    %c1_i32 = arith.constant 1 : i32
    %1 = arith.select %0, %c1_i32, %c2_i32 : i32
    %2 = arith.remsi %arg1, %1 : i32
    %c0_i32_0 = arith.constant 0 : i32
    %3 = arith.cmpi ne, %2, %c0_i32_0 : i32
    %c0_i32_1 = arith.constant 0 : i32
    %4 = arith.cmpi slt, %2, %c0_i32_1 : i32
    %c0_i32_2 = arith.constant 0 : i32
    %5 = arith.cmpi slt, %1, %c0_i32_2 : i32
    %6 = arith.xori %4, %5 : i1
    %7 = arith.andi %6, %3 : i1
    %8 = arith.addi %2, %1 : i32
    %9 = arith.select %7, %8, %2 : i32
    %c0_i32_3 = arith.constant 0 : i32
    %10 = arith.cmpi eq, %9, %c0_i32_3 : i32
    %c0_i32_4 = arith.constant 0 : i32
    %11 = arith.cmpi eq, %arg1, %c0_i32_4 : i32
    %12 = arith.extui %11 : i1 to i32
    %c0_i32_5 = arith.constant 0 : i32
    %13 = arith.cmpi ne, %12, %c0_i32_5 : i32
    scf.if %13 {
      %c0_92 = arith.constant 0 : index
      %c0_93 = arith.constant 0 : index
      %c0_94 = arith.constant 0 : index
      %121 = vector.load %arg2[%c0_92, %c0_93, %c0_94] : memref<1x32x16xbf16, #tpu.memory_space<vmem>>, vector<1x32x16xbf16>
      %122 = vector.shape_cast %121 : vector<1x32x16xbf16> to vector<32x16xbf16>
      %123 = arith.extf %122 : vector<32x16xbf16> to vector<32x16xf32>
      %c0_95 = arith.constant 0 : index
      %c0_96 = arith.constant 0 : index
      %124 = vector.load %arg7[%c0_95, %c0_96] : memref<32x16xf32, #tpu.memory_space<vmem>>, vector<32x16xf32>
      tpu.vector_store %arg7[%c0_95, %c0_96], %123 {strides = array<i32>} : memref<32x16xf32, #tpu.memory_space<vmem>>, vector<32x16xf32>,
    } else {
    }
    %14 = arith.extui %10 : i1 to i32
    %c0_i32_6 = arith.constant 0 : i32
    %15 = arith.cmpi ne, %14, %c0_i32_6 : i32
    scf.if %15 {
      %c0_92 = arith.constant 0 : index
      %c0_93 = arith.constant 0 : index
      %121 = vector.load %arg7[%c0_92, %c0_93] : memref<32x16xf32, #tpu.memory_space<vmem>>, vector<32x16xf32>
      %c0_94 = arith.constant 0 : index
      %c0_95 = arith.constant 0 : index
      %122 = vector.load %arg8[%c0_94, %c0_95] : memref<32x16xf32, #tpu.memory_space<vmem>>, vector<32x16xf32>
      tpu.vector_store %arg8[%c0_94, %c0_95], %121 {strides = array<i32>} : memref<32x16xf32, #tpu.memory_space<vmem>>, vector<32x16xf32>,
    } else {
    }
    %c0 = arith.constant 0 : index
    %c0_7 = arith.constant 0 : index
    %16 = vector.load %arg7[%c0, %c0_7] : memref<32x16xf32, #tpu.memory_space<vmem>>, vector<32x16xf32>
    %17 = arith.truncf %16 : vector<32x16xf32> to vector<32x16xbf16>
    %cst = arith.constant 0.000000e+00 : f32
    %18 = vector.broadcast %cst : f32 to vector<32x16xf32>
    %c0_8 = arith.constant 0 : index
    %c0_9 = arith.constant 0 : index
    %c0_10 = arith.constant 0 : index
    %19 = vector.load %arg3[%c0_8, %c0_9, %c0_10] : memref<9x16x16xbf16, #tpu.memory_space<vmem>>, vector<1x16x16xbf16>
    %20 = vector.shape_cast %19 : vector<1x16x16xbf16> to vector<16x16xbf16>
    %cst_11 = arith.constant dense<0.000000e+00> : vector<32x16xf32>
    %21 = tpu.matmul %17, %20, %cst_11 {dimension_numbers = #tpu.dot_dimension_numbers<[1], [0], [0], [1], [0, 0, 1, 1], [], []>} : vector<32x16xbf16>, vector<16x16xbf16>, vector<32x16xf32> -> vector<32x16xf32>
    %c0_12 = arith.constant 0 : index
    %c0_13 = arith.constant 0 : index
    %c0_14 = arith.constant 0 : index
    %c0_15 = arith.constant 0 : index
    %22 = vector.load %arg4[%c0_12, %c0_13, %c0_14, %c0_15] : memref<1x9x32x32xbf16, #tpu.memory_space<vmem>>, vector<1x1x32x32xbf16>
    %23 = vector.shape_cast %22 : vector<1x1x32x32xbf16> to vector<32x32xbf16>
    %24 = arith.truncf %21 : vector<32x16xf32> to vector<32x16xbf16>
    %cst_16 = arith.constant dense<0.000000e+00> : vector<32x16xf32>
    %25 = tpu.matmul %23, %24, %cst_16 {dimension_numbers = #tpu.dot_dimension_numbers<[1], [0], [0], [1], [0, 0, 1, 1], [], []>} : vector<32x32xbf16>, vector<32x16xbf16>, vector<32x16xf32> -> vector<32x16xf32>
    %26 = arith.addf %18, %25 : vector<32x16xf32>
    %c1 = arith.constant 1 : index
    %c0_17 = arith.constant 0 : index
    %c0_18 = arith.constant 0 : index
    %27 = vector.load %arg3[%c1, %c0_17, %c0_18] : memref<9x16x16xbf16, #tpu.memory_space<vmem>>, vector<1x16x16xbf16>
    %28 = vector.shape_cast %27 : vector<1x16x16xbf16> to vector<16x16xbf16>
    %cst_19 = arith.constant dense<0.000000e+00> : vector<32x16xf32>
    %29 = tpu.matmul %17, %28, %cst_19 {dimension_numbers = #tpu.dot_dimension_numbers<[1], [0], [0], [1], [0, 0, 1, 1], [], []>} : vector<32x16xbf16>, vector<16x16xbf16>, vector<32x16xf32> -> vector<32x16xf32>
    %c0_20 = arith.constant 0 : index
    %c1_21 = arith.constant 1 : index
    %c0_22 = arith.constant 0 : index
    %c0_23 = arith.constant 0 : index
    %30 = vector.load %arg4[%c0_20, %c1_21, %c0_22, %c0_23] : memref<1x9x32x32xbf16, #tpu.memory_space<vmem>>, vector<1x1x32x32xbf16>
    %31 = vector.shape_cast %30 : vector<1x1x32x32xbf16> to vector<32x32xbf16>
    %32 = arith.truncf %29 : vector<32x16xf32> to vector<32x16xbf16>
    %cst_24 = arith.constant dense<0.000000e+00> : vector<32x16xf32>
    %33 = tpu.matmul %31, %32, %cst_24 {dimension_numbers = #tpu.dot_dimension_numbers<[1], [0], [0], [1], [0, 0, 1, 1], [], []>} : vector<32x32xbf16>, vector<32x16xbf16>, vector<32x16xf32> -> vector<32x16xf32>
    %34 = arith.addf %26, %33 : vector<32x16xf32>
    %c2 = arith.constant 2 : index
    %c0_25 = arith.constant 0 : index
    %c0_26 = arith.constant 0 : index
    %35 = vector.load %arg3[%c2, %c0_25, %c0_26] : memref<9x16x16xbf16, #tpu.memory_space<vmem>>, vector<1x16x16xbf16>
    %36 = vector.shape_cast %35 : vector<1x16x16xbf16> to vector<16x16xbf16>
    %cst_27 = arith.constant dense<0.000000e+00> : vector<32x16xf32>
    %37 = tpu.matmul %17, %36, %cst_27 {dimension_numbers = #tpu.dot_dimension_numbers<[1], [0], [0], [1], [0, 0, 1, 1], [], []>} : vector<32x16xbf16>, vector<16x16xbf16>, vector<32x16xf32> -> vector<32x16xf32>
    %c0_28 = arith.constant 0 : index
    %c2_29 = arith.constant 2 : index
    %c0_30 = arith.constant 0 : index
    %c0_31 = arith.constant 0 : index
    %38 = vector.load %arg4[%c0_28, %c2_29, %c0_30, %c0_31] : memref<1x9x32x32xbf16, #tpu.memory_space<vmem>>, vector<1x1x32x32xbf16>
    %39 = vector.shape_cast %38 : vector<1x1x32x32xbf16> to vector<32x32xbf16>
    %40 = arith.truncf %37 : vector<32x16xf32> to vector<32x16xbf16>
    %cst_32 = arith.constant dense<0.000000e+00> : vector<32x16xf32>
    %41 = tpu.matmul %39, %40, %cst_32 {dimension_numbers = #tpu.dot_dimension_numbers<[1], [0], [0], [1], [0, 0, 1, 1], [], []>} : vector<32x32xbf16>, vector<32x16xbf16>, vector<32x16xf32> -> vector<32x16xf32>
    %42 = arith.addf %34, %41 : vector<32x16xf32>
    %c3 = arith.constant 3 : index
    %c0_33 = arith.constant 0 : index
    %c0_34 = arith.constant 0 : index
    %43 = vector.load %arg3[%c3, %c0_33, %c0_34] : memref<9x16x16xbf16, #tpu.memory_space<vmem>>, vector<1x16x16xbf16>
    %44 = vector.shape_cast %43 : vector<1x16x16xbf16> to vector<16x16xbf16>
    %cst_35 = arith.constant dense<0.000000e+00> : vector<32x16xf32>
    %45 = tpu.matmul %17, %44, %cst_35 {dimension_numbers = #tpu.dot_dimension_numbers<[1], [0], [0], [1], [0, 0, 1, 1], [], []>} : vector<32x16xbf16>, vector<16x16xbf16>, vector<32x16xf32> -> vector<32x16xf32>
    %c0_36 = arith.constant 0 : index
    %c3_37 = arith.constant 3 : index
    %c0_38 = arith.constant 0 : index
    %c0_39 = arith.constant 0 : index
    %46 = vector.load %arg4[%c0_36, %c3_37, %c0_38, %c0_39] : memref<1x9x32x32xbf16, #tpu.memory_space<vmem>>, vector<1x1x32x32xbf16>
    %47 = vector.shape_cast %46 : vector<1x1x32x32xbf16> to vector<32x32xbf16>
    %48 = arith.truncf %45 : vector<32x16xf32> to vector<32x16xbf16>
    %cst_40 = arith.constant dense<0.000000e+00> : vector<32x16xf32>
    %49 = tpu.matmul %47, %48, %cst_40 {dimension_numbers = #tpu.dot_dimension_numbers<[1], [0], [0], [1], [0, 0, 1, 1], [], []>} : vector<32x32xbf16>, vector<32x16xbf16>, vector<32x16xf32> -> vector<32x16xf32>
    %50 = arith.addf %42, %49 : vector<32x16xf32>
    %c4 = arith.constant 4 : index
    %c0_41 = arith.constant 0 : index
    %c0_42 = arith.constant 0 : index
    %51 = vector.load %arg3[%c4, %c0_41, %c0_42] : memref<9x16x16xbf16, #tpu.memory_space<vmem>>, vector<1x16x16xbf16>
    %52 = vector.shape_cast %51 : vector<1x16x16xbf16> to vector<16x16xbf16>
    %cst_43 = arith.constant dense<0.000000e+00> : vector<32x16xf32>
    %53 = tpu.matmul %17, %52, %cst_43 {dimension_numbers = #tpu.dot_dimension_numbers<[1], [0], [0], [1], [0, 0, 1, 1], [], []>} : vector<32x16xbf16>, vector<16x16xbf16>, vector<32x16xf32> -> vector<32x16xf32>
    %c0_44 = arith.constant 0 : index
    %c4_45 = arith.constant 4 : index
    %c0_46 = arith.constant 0 : index
    %c0_47 = arith.constant 0 : index
    %54 = vector.load %arg4[%c0_44, %c4_45, %c0_46, %c0_47] : memref<1x9x32x32xbf16, #tpu.memory_space<vmem>>, vector<1x1x32x32xbf16>
    %55 = vector.shape_cast %54 : vector<1x1x32x32xbf16> to vector<32x32xbf16>
    %56 = arith.truncf %53 : vector<32x16xf32> to vector<32x16xbf16>
    %cst_48 = arith.constant dense<0.000000e+00> : vector<32x16xf32>
    %57 = tpu.matmul %55, %56, %cst_48 {dimension_numbers = #tpu.dot_dimension_numbers<[1], [0], [0], [1], [0, 0, 1, 1], [], []>} : vector<32x32xbf16>, vector<32x16xbf16>, vector<32x16xf32> -> vector<32x16xf32>
    %58 = arith.addf %50, %57 : vector<32x16xf32>
    %c5 = arith.constant 5 : index
    %c0_49 = arith.constant 0 : index
    %c0_50 = arith.constant 0 : index
    %59 = vector.load %arg3[%c5, %c0_49, %c0_50] : memref<9x16x16xbf16, #tpu.memory_space<vmem>>, vector<1x16x16xbf16>
    %60 = vector.shape_cast %59 : vector<1x16x16xbf16> to vector<16x16xbf16>
    %cst_51 = arith.constant dense<0.000000e+00> : vector<32x16xf32>
    %61 = tpu.matmul %17, %60, %cst_51 {dimension_numbers = #tpu.dot_dimension_numbers<[1], [0], [0], [1], [0, 0, 1, 1], [], []>} : vector<32x16xbf16>, vector<16x16xbf16>, vector<32x16xf32> -> vector<32x16xf32>
    %c0_52 = arith.constant 0 : index
    %c5_53 = arith.constant 5 : index
    %c0_54 = arith.constant 0 : index
    %c0_55 = arith.constant 0 : index
    %62 = vector.load %arg4[%c0_52, %c5_53, %c0_54, %c0_55] : memref<1x9x32x32xbf16, #tpu.memory_space<vmem>>, vector<1x1x32x32xbf16>
    %63 = vector.shape_cast %62 : vector<1x1x32x32xbf16> to vector<32x32xbf16>
    %64 = arith.truncf %61 : vector<32x16xf32> to vector<32x16xbf16>
    %cst_56 = arith.constant dense<0.000000e+00> : vector<32x16xf32>
    %65 = tpu.matmul %63, %64, %cst_56 {dimension_numbers = #tpu.dot_dimension_numbers<[1], [0], [0], [1], [0, 0, 1, 1], [], []>} : vector<32x32xbf16>, vector<32x16xbf16>, vector<32x16xf32> -> vector<32x16xf32>
    %66 = arith.addf %58, %65 : vector<32x16xf32>
    %c6 = arith.constant 6 : index
    %c0_57 = arith.constant 0 : index
    %c0_58 = arith.constant 0 : index
    %67 = vector.load %arg3[%c6, %c0_57, %c0_58] : memref<9x16x16xbf16, #tpu.memory_space<vmem>>, vector<1x16x16xbf16>
    %68 = vector.shape_cast %67 : vector<1x16x16xbf16> to vector<16x16xbf16>
    %cst_59 = arith.constant dense<0.000000e+00> : vector<32x16xf32>
    %69 = tpu.matmul %17, %68, %cst_59 {dimension_numbers = #tpu.dot_dimension_numbers<[1], [0], [0], [1], [0, 0, 1, 1], [], []>} : vector<32x16xbf16>, vector<16x16xbf16>, vector<32x16xf32> -> vector<32x16xf32>
    %c0_60 = arith.constant 0 : index
    %c6_61 = arith.constant 6 : index
    %c0_62 = arith.constant 0 : index
    %c0_63 = arith.constant 0 : index
    %70 = vector.load %arg4[%c0_60, %c6_61, %c0_62, %c0_63] : memref<1x9x32x32xbf16, #tpu.memory_space<vmem>>, vector<1x1x32x32xbf16>
    %71 = vector.shape_cast %70 : vector<1x1x32x32xbf16> to vector<32x32xbf16>
    %72 = arith.truncf %69 : vector<32x16xf32> to vector<32x16xbf16>
    %cst_64 = arith.constant dense<0.000000e+00> : vector<32x16xf32>
    %73 = tpu.matmul %71, %72, %cst_64 {dimension_numbers = #tpu.dot_dimension_numbers<[1], [0], [0], [1], [0, 0, 1, 1], [], []>} : vector<32x32xbf16>, vector<32x16xbf16>, vector<32x16xf32> -> vector<32x16xf32>
    %74 = arith.addf %66, %73 : vector<32x16xf32>
    %c7 = arith.constant 7 : index
    %c0_65 = arith.constant 0 : index
    %c0_66 = arith.constant 0 : index
    %75 = vector.load %arg3[%c7, %c0_65, %c0_66] : memref<9x16x16xbf16, #tpu.memory_space<vmem>>, vector<1x16x16xbf16>
    %76 = vector.shape_cast %75 : vector<1x16x16xbf16> to vector<16x16xbf16>
    %cst_67 = arith.constant dense<0.000000e+00> : vector<32x16xf32>
    %77 = tpu.matmul %17, %76, %cst_67 {dimension_numbers = #tpu.dot_dimension_numbers<[1], [0], [0], [1], [0, 0, 1, 1], [], []>} : vector<32x16xbf16>, vector<16x16xbf16>, vector<32x16xf32> -> vector<32x16xf32>
    %c0_68 = arith.constant 0 : index
    %c7_69 = arith.constant 7 : index
    %c0_70 = arith.constant 0 : index
    %c0_71 = arith.constant 0 : index
    %78 = vector.load %arg4[%c0_68, %c7_69, %c0_70, %c0_71] : memref<1x9x32x32xbf16, #tpu.memory_space<vmem>>, vector<1x1x32x32xbf16>
    %79 = vector.shape_cast %78 : vector<1x1x32x32xbf16> to vector<32x32xbf16>
    %80 = arith.truncf %77 : vector<32x16xf32> to vector<32x16xbf16>
    %cst_72 = arith.constant dense<0.000000e+00> : vector<32x16xf32>
    %81 = tpu.matmul %79, %80, %cst_72 {dimension_numbers = #tpu.dot_dimension_numbers<[1], [0], [0], [1], [0, 0, 1, 1], [], []>} : vector<32x32xbf16>, vector<32x16xbf16>, vector<32x16xf32> -> vector<32x16xf32>
    %82 = arith.addf %74, %81 : vector<32x16xf32>
    %c8 = arith.constant 8 : index
    %c0_73 = arith.constant 0 : index
    %c0_74 = arith.constant 0 : index
    %83 = vector.load %arg3[%c8, %c0_73, %c0_74] : memref<9x16x16xbf16, #tpu.memory_space<vmem>>, vector<1x16x16xbf16>
    %84 = vector.shape_cast %83 : vector<1x16x16xbf16> to vector<16x16xbf16>
    %cst_75 = arith.constant dense<0.000000e+00> : vector<32x16xf32>
    %85 = tpu.matmul %17, %84, %cst_75 {dimension_numbers = #tpu.dot_dimension_numbers<[1], [0], [0], [1], [0, 0, 1, 1], [], []>} : vector<32x16xbf16>, vector<16x16xbf16>, vector<32x16xf32> -> vector<32x16xf32>
    %c0_76 = arith.constant 0 : index
    %c8_77 = arith.constant 8 : index
    %c0_78 = arith.constant 0 : index
    %c0_79 = arith.constant 0 : index
    %86 = vector.load %arg4[%c0_76, %c8_77, %c0_78, %c0_79] : memref<1x9x32x32xbf16, #tpu.memory_space<vmem>>, vector<1x1x32x32xbf16>
    %87 = vector.shape_cast %86 : vector<1x1x32x32xbf16> to vector<32x32xbf16>
    %88 = arith.truncf %85 : vector<32x16xf32> to vector<32x16xbf16>
    %cst_80 = arith.constant dense<0.000000e+00> : vector<32x16xf32>
    %89 = tpu.matmul %87, %88, %cst_80 {dimension_numbers = #tpu.dot_dimension_numbers<[1], [0], [0], [1], [0, 0, 1, 1], [], []>} : vector<32x32xbf16>, vector<32x16xbf16>, vector<32x16xf32> -> vector<32x16xf32>
    %90 = arith.addf %82, %89 : vector<32x16xf32>
    %c0_81 = arith.constant 0 : index
    %c0_82 = arith.constant 0 : index
    %c0_83 = arith.constant 0 : index
    %91 = vector.load %arg5[%c0_81, %c0_82, %c0_83] : memref<1x32x1xf32, #tpu.memory_space<vmem>>, vector<1x32x1xf32>
    %92 = vector.shape_cast %91 : vector<1x32x1xf32> to vector<32x1xf32>
    %93 = vector.broadcast %92 : vector<32x1xf32> to vector<32x16xf32>
    %94 = arith.addf %90, %93 : vector<32x16xf32>
    %cst_84 = arith.constant dense<0.000000e+00> : vector<32xf32>
    %95 = vector.multi_reduction <add>, %94, %cst_84 [1] : vector<32x16xf32> to vector<32xf32>
    %96 = vector.shape_cast %95 : vector<32xf32> to vector<32x1xf32>
    %cst_85 = arith.constant 1.600000e+01 : f32
    %97 = vector.broadcast %cst_85 : f32 to vector<32x1xf32>
    %98 = arith.divf %96, %97 : vector<32x1xf32>
    %99 = vector.broadcast %98 : vector<32x1xf32> to vector<32x16xf32>
    %100 = arith.subf %94, %99 : vector<32x16xf32>
    %101 = arith.mulf %100, %100 : vector<32x16xf32>
    %cst_86 = arith.constant dense<0.000000e+00> : vector<32xf32>
    %102 = vector.multi_reduction <add>, %101, %cst_86 [1] : vector<32x16xf32> to vector<32xf32>
    %103 = vector.shape_cast %102 : vector<32xf32> to vector<32x1xf32>
    %cst_87 = arith.constant 1.600000e+01 : f32
    %104 = vector.broadcast %cst_87 : f32 to vector<32x1xf32>
    %105 = arith.divf %103, %104 : vector<32x1xf32>
    %106 = vector.broadcast %98 : vector<32x1xf32> to vector<32x16xf32>
    %107 = arith.subf %94, %106 : vector<32x16xf32>
    %cst_88 = arith.constant 9.99999974E-6 : f32
    %108 = vector.broadcast %cst_88 : f32 to vector<32x1xf32>
    %109 = arith.addf %105, %108 : vector<32x1xf32>
    %110 = math.rsqrt %109 : vector<32x1xf32>
    %111 = vector.broadcast %110 : vector<32x1xf32> to vector<32x16xf32>
    %112 = arith.mulf %107, %111 : vector<32x16xf32>
    %113 = arith.extui %10 : i1 to i32
    %c0_i32_89 = arith.constant 0 : i32
    %114 = arith.cmpi ne, %113, %c0_i32_89 : i32
    scf.if %114 {
      %cst_92 = arith.constant 0.000000e+00 : f32
      %121 = vector.broadcast %cst_92 : f32 to vector<32x16xf32>
      %122 = arith.maximumf %112, %121 : vector<32x16xf32>
      %c0_93 = arith.constant 0 : index
      %c0_94 = arith.constant 0 : index
      %123 = vector.load %arg7[%c0_93, %c0_94] : memref<32x16xf32, #tpu.memory_space<vmem>>, vector<32x16xf32>
      tpu.vector_store %arg7[%c0_93, %c0_94], %122 {strides = array<i32>} : memref<32x16xf32, #tpu.memory_space<vmem>>, vector<32x16xf32>,
    } else {
    }
    %true = arith.constant true
    %115 = arith.xori %10, %true : i1
    %116 = arith.extui %115 : i1 to i32
    %c0_i32_90 = arith.constant 0 : i32
    %117 = arith.cmpi ne, %116, %c0_i32_90 : i32
    scf.if %117 {
      %c0_92 = arith.constant 0 : index
      %c0_93 = arith.constant 0 : index
      %121 = vector.load %arg8[%c0_92, %c0_93] : memref<32x16xf32, #tpu.memory_space<vmem>>, vector<32x16xf32>
      %122 = arith.addf %121, %112 : vector<32x16xf32>
      %c0_94 = arith.constant 0 : index
      %c0_95 = arith.constant 0 : index
      %123 = vector.load %arg7[%c0_94, %c0_95] : memref<32x16xf32, #tpu.memory_space<vmem>>, vector<32x16xf32>
      tpu.vector_store %arg7[%c0_94, %c0_95], %122 {strides = array<i32>} : memref<32x16xf32, #tpu.memory_space<vmem>>, vector<32x16xf32>,
    } else {
    }
    %c17_i32 = arith.constant 17 : i32
    %118 = arith.cmpi eq, %arg1, %c17_i32 : i32
    %119 = arith.extui %118 : i1 to i32
    %c0_i32_91 = arith.constant 0 : i32
    %120 = arith.cmpi ne, %119, %c0_i32_91 : i32
    scf.if %120 {
      %c0_92 = arith.constant 0 : index
      %c0_93 = arith.constant 0 : index
      %121 = vector.load %arg7[%c0_92, %c0_93] : memref<32x16xf32, #tpu.memory_space<vmem>>, vector<32x16xf32>
      %122 = arith.truncf %121 : vector<32x16xf32> to vector<32x16xbf16>
      %c0_94 = arith.constant 0 : index
      %c0_95 = arith.constant 0 : index
      %c0_96 = arith.constant 0 : index
      %123 = vector.load %arg6[%c0_94, %c0_95, %c0_96] : memref<1x32x16xbf16, #tpu.memory_space<vmem>>, vector<1x32x16xbf16>
      %124 = vector.shape_cast %123 : vector<1x32x16xbf16> to vector<32x16xbf16>
      %125 = vector.shape_cast %122 : vector<32x16xbf16> to vector<1x32x16xbf16>
      tpu.vector_store %arg6[%c0_94, %c0_95, %c0_96], %125 {strides = array<i32>} : memref<1x32x16xbf16, #tpu.memory_space<vmem>>, vector<1x32x16xbf16>,
    } else {
    }
    return
  }
  func.func @transform_0(%arg0: i32, %arg1: i32) -> (i32, i32, i32) {
    %c0_i32 = arith.constant 0 : i32
    %c0_i32_0 = arith.constant 0 : i32
    %c0_i32_1 = arith.constant 0 : i32
    return %arg0, %c0_i32, %c0_i32_0 : i32, i32, i32
  }
  func.func @transform_1(%arg0: i32, %arg1: i32) -> (i32, i32, i32) {
    %c0_i32 = arith.constant 0 : i32
    %c0_i32_0 = arith.constant 0 : i32
    %c0_i32_1 = arith.constant 0 : i32
    %c0_i32_2 = arith.constant 0 : i32
    return %c0_i32, %c0_i32_0, %c0_i32_1 : i32, i32, i32
  }
  func.func @transform_2(%arg0: i32, %arg1: i32) -> (i32, i32, i32, i32) {
    %c0_i32 = arith.constant 0 : i32
    %c0_i32_0 = arith.constant 0 : i32
    %c0_i32_1 = arith.constant 0 : i32
    %c0_i32_2 = arith.constant 0 : i32
    return %arg1, %c0_i32, %c0_i32_0, %c0_i32_1 : i32, i32, i32, i32
  }
  func.func @transform_3(%arg0: i32, %arg1: i32) -> (i32, i32, i32) {
    %c0_i32 = arith.constant 0 : i32
    %c0_i32_0 = arith.constant 0 : i32
    %c0_i32_1 = arith.constant 0 : i32
    return %arg1, %c0_i32, %c0_i32_0 : i32, i32, i32
  }
  func.func @transform_4(%arg0: i32, %arg1: i32) -> (i32, i32, i32) {
    %c0_i32 = arith.constant 0 : i32
    %c0_i32_0 = arith.constant 0 : i32
    %c0_i32_1 = arith.constant 0 : i32
    return %arg0, %c0_i32, %c0_i32_0 : i32, i32, i32
  }
}

module attributes {stable_mosaic.version = 11 : i64} {
  func.func @_conv_gemm_kernel(%arg0: i32, %arg1: memref<1x288x64xbf16, #tpu.memory_space<vmem>>, %arg2: memref<16x288xbf16, #tpu.memory_space<vmem>>, %arg3: memref<16x1xf32, #tpu.memory_space<vmem>>, %arg4: memref<1x16x64xbf16, #tpu.memory_space<vmem>>) attributes {dimension_semantics = [#tpu.dimension_semantics<parallel>], iteration_bounds = array<i64: 2>, scalar_prefetch = 0 : i64, scratch_operands = 0 : i64, tpu.core_type = #tpu.core_type<tc>, window_params = [{transform_indices = @transform_0, window_bounds = array<i64: 1, 288, 64>}, {pipeline_mode = #tpu.pipeline_mode<synchronous>, transform_indices = @transform_1, window_bounds = array<i64: 16, 288>}, {pipeline_mode = #tpu.pipeline_mode<synchronous>, transform_indices = @transform_2, window_bounds = array<i64: 16, 1>}, {transform_indices = @transform_3, window_bounds = array<i64: 1, 16, 64>}]} {
    %c0 = arith.constant 0 : index
    %c0_0 = arith.constant 0 : index
    %0 = vector.load %arg2[%c0, %c0_0] : memref<16x288xbf16, #tpu.memory_space<vmem>>, vector<16x288xbf16>
    %c0_1 = arith.constant 0 : index
    %c0_2 = arith.constant 0 : index
    %c0_3 = arith.constant 0 : index
    %1 = vector.load %arg1[%c0_1, %c0_2, %c0_3] : memref<1x288x64xbf16, #tpu.memory_space<vmem>>, vector<1x288x64xbf16>
    %2 = vector.shape_cast %1 : vector<1x288x64xbf16> to vector<288x64xbf16>
    %cst = arith.constant dense<0.000000e+00> : vector<16x64xf32>
    %3 = tpu.matmul %0, %2, %cst {dimension_numbers = #tpu.dot_dimension_numbers<[1], [0], [0], [1], [0, 0, 1, 1], [], []>} : vector<16x288xbf16>, vector<288x64xbf16>, vector<16x64xf32> -> vector<16x64xf32>
    %c0_4 = arith.constant 0 : index
    %c0_5 = arith.constant 0 : index
    %4 = vector.load %arg3[%c0_4, %c0_5] : memref<16x1xf32, #tpu.memory_space<vmem>>, vector<16x1xf32>
    %5 = vector.broadcast %4 : vector<16x1xf32> to vector<16x64xf32>
    %6 = arith.addf %3, %5 : vector<16x64xf32>
    %cst_6 = arith.constant dense<0.000000e+00> : vector<16xf32>
    %7 = vector.multi_reduction <add>, %6, %cst_6 [1] : vector<16x64xf32> to vector<16xf32>
    %8 = vector.shape_cast %7 : vector<16xf32> to vector<16x1xf32>
    %cst_7 = arith.constant 6.400000e+01 : f32
    %9 = vector.broadcast %cst_7 : f32 to vector<16x1xf32>
    %10 = arith.divf %8, %9 : vector<16x1xf32>
    %11 = vector.broadcast %10 : vector<16x1xf32> to vector<16x64xf32>
    %12 = arith.subf %6, %11 : vector<16x64xf32>
    %13 = arith.mulf %12, %12 : vector<16x64xf32>
    %cst_8 = arith.constant dense<0.000000e+00> : vector<16xf32>
    %14 = vector.multi_reduction <add>, %13, %cst_8 [1] : vector<16x64xf32> to vector<16xf32>
    %15 = vector.shape_cast %14 : vector<16xf32> to vector<16x1xf32>
    %cst_9 = arith.constant 6.400000e+01 : f32
    %16 = vector.broadcast %cst_9 : f32 to vector<16x1xf32>
    %17 = arith.divf %15, %16 : vector<16x1xf32>
    %18 = vector.broadcast %10 : vector<16x1xf32> to vector<16x64xf32>
    %19 = arith.subf %6, %18 : vector<16x64xf32>
    %cst_10 = arith.constant 9.99999974E-6 : f32
    %20 = vector.broadcast %cst_10 : f32 to vector<16x1xf32>
    %21 = arith.addf %17, %20 : vector<16x1xf32>
    %22 = math.rsqrt %21 : vector<16x1xf32>
    %23 = vector.broadcast %22 : vector<16x1xf32> to vector<16x64xf32>
    %24 = arith.mulf %19, %23 : vector<16x64xf32>
    %cst_11 = arith.constant 0.000000e+00 : f32
    %25 = vector.broadcast %cst_11 : f32 to vector<16x64xf32>
    %26 = arith.maximumf %24, %25 : vector<16x64xf32>
    %27 = arith.truncf %26 : vector<16x64xf32> to vector<16x64xbf16>
    %c0_12 = arith.constant 0 : index
    %c0_13 = arith.constant 0 : index
    %c0_14 = arith.constant 0 : index
    %28 = vector.load %arg4[%c0_12, %c0_13, %c0_14] : memref<1x16x64xbf16, #tpu.memory_space<vmem>>, vector<1x16x64xbf16>
    %29 = vector.shape_cast %28 : vector<1x16x64xbf16> to vector<16x64xbf16>
    %30 = vector.shape_cast %27 : vector<16x64xbf16> to vector<1x16x64xbf16>
    tpu.vector_store %arg4[%c0_12, %c0_13, %c0_14], %30 {strides = array<i32>} : memref<1x16x64xbf16, #tpu.memory_space<vmem>>, vector<1x16x64xbf16>,
    return
  }
  func.func @transform_0(%arg0: i32) -> (i32, i32, i32) {
    %c0_i32 = arith.constant 0 : i32
    %c0_i32_0 = arith.constant 0 : i32
    %c0_i32_1 = arith.constant 0 : i32
    return %arg0, %c0_i32, %c0_i32_0 : i32, i32, i32
  }
  func.func @transform_1(%arg0: i32) -> (i32, i32) {
    %c0_i32 = arith.constant 0 : i32
    %c0_i32_0 = arith.constant 0 : i32
    %c0_i32_1 = arith.constant 0 : i32
    return %c0_i32, %c0_i32_0 : i32, i32
  }
  func.func @transform_2(%arg0: i32) -> (i32, i32) {
    %c0_i32 = arith.constant 0 : i32
    %c0_i32_0 = arith.constant 0 : i32
    %c0_i32_1 = arith.constant 0 : i32
    return %c0_i32, %c0_i32_0 : i32, i32
  }
  func.func @transform_3(%arg0: i32) -> (i32, i32, i32) {
    %c0_i32 = arith.constant 0 : i32
    %c0_i32_0 = arith.constant 0 : i32
    %c0_i32_1 = arith.constant 0 : i32
    return %arg0, %c0_i32, %c0_i32_0 : i32, i32, i32
  }
}

module attributes {stable_mosaic.version = 11 : i64} {
  func.func @_conv_gemm_kernel(%arg0: i32, %arg1: memref<1x144x256xbf16, #tpu.memory_space<vmem>>, %arg2: memref<8x144xbf16, #tpu.memory_space<vmem>>, %arg3: memref<8x1xf32, #tpu.memory_space<vmem>>, %arg4: memref<1x8x256xbf16, #tpu.memory_space<vmem>>) attributes {dimension_semantics = [#tpu.dimension_semantics<parallel>], iteration_bounds = array<i64: 2>, scalar_prefetch = 0 : i64, scratch_operands = 0 : i64, tpu.core_type = #tpu.core_type<tc>, window_params = [{transform_indices = @transform_0, window_bounds = array<i64: 1, 144, 256>}, {pipeline_mode = #tpu.pipeline_mode<synchronous>, transform_indices = @transform_1, window_bounds = array<i64: 8, 144>}, {pipeline_mode = #tpu.pipeline_mode<synchronous>, transform_indices = @transform_2, window_bounds = array<i64: 8, 1>}, {transform_indices = @transform_3, window_bounds = array<i64: 1, 8, 256>}]} {
    %c0 = arith.constant 0 : index
    %c0_0 = arith.constant 0 : index
    %0 = vector.load %arg2[%c0, %c0_0] : memref<8x144xbf16, #tpu.memory_space<vmem>>, vector<8x144xbf16>
    %c0_1 = arith.constant 0 : index
    %c0_2 = arith.constant 0 : index
    %c0_3 = arith.constant 0 : index
    %1 = vector.load %arg1[%c0_1, %c0_2, %c0_3] : memref<1x144x256xbf16, #tpu.memory_space<vmem>>, vector<1x144x256xbf16>
    %2 = vector.shape_cast %1 : vector<1x144x256xbf16> to vector<144x256xbf16>
    %cst = arith.constant dense<0.000000e+00> : vector<8x256xf32>
    %3 = tpu.matmul %0, %2, %cst {dimension_numbers = #tpu.dot_dimension_numbers<[1], [0], [0], [1], [0, 0, 1, 1], [], []>} : vector<8x144xbf16>, vector<144x256xbf16>, vector<8x256xf32> -> vector<8x256xf32>
    %c0_4 = arith.constant 0 : index
    %c0_5 = arith.constant 0 : index
    %4 = vector.load %arg3[%c0_4, %c0_5] : memref<8x1xf32, #tpu.memory_space<vmem>>, vector<8x1xf32>
    %5 = vector.broadcast %4 : vector<8x1xf32> to vector<8x256xf32>
    %6 = arith.addf %3, %5 : vector<8x256xf32>
    %cst_6 = arith.constant dense<0.000000e+00> : vector<8xf32>
    %7 = vector.multi_reduction <add>, %6, %cst_6 [1] : vector<8x256xf32> to vector<8xf32>
    %8 = vector.shape_cast %7 : vector<8xf32> to vector<8x1xf32>
    %cst_7 = arith.constant 2.560000e+02 : f32
    %9 = vector.broadcast %cst_7 : f32 to vector<8x1xf32>
    %10 = arith.divf %8, %9 : vector<8x1xf32>
    %11 = vector.broadcast %10 : vector<8x1xf32> to vector<8x256xf32>
    %12 = arith.subf %6, %11 : vector<8x256xf32>
    %13 = arith.mulf %12, %12 : vector<8x256xf32>
    %cst_8 = arith.constant dense<0.000000e+00> : vector<8xf32>
    %14 = vector.multi_reduction <add>, %13, %cst_8 [1] : vector<8x256xf32> to vector<8xf32>
    %15 = vector.shape_cast %14 : vector<8xf32> to vector<8x1xf32>
    %cst_9 = arith.constant 2.560000e+02 : f32
    %16 = vector.broadcast %cst_9 : f32 to vector<8x1xf32>
    %17 = arith.divf %15, %16 : vector<8x1xf32>
    %18 = vector.broadcast %10 : vector<8x1xf32> to vector<8x256xf32>
    %19 = arith.subf %6, %18 : vector<8x256xf32>
    %cst_10 = arith.constant 9.99999974E-6 : f32
    %20 = vector.broadcast %cst_10 : f32 to vector<8x1xf32>
    %21 = arith.addf %17, %20 : vector<8x1xf32>
    %22 = math.rsqrt %21 : vector<8x1xf32>
    %23 = vector.broadcast %22 : vector<8x1xf32> to vector<8x256xf32>
    %24 = arith.mulf %19, %23 : vector<8x256xf32>
    %cst_11 = arith.constant 0.000000e+00 : f32
    %25 = vector.broadcast %cst_11 : f32 to vector<8x256xf32>
    %26 = arith.maximumf %24, %25 : vector<8x256xf32>
    %27 = arith.truncf %26 : vector<8x256xf32> to vector<8x256xbf16>
    %c0_12 = arith.constant 0 : index
    %c0_13 = arith.constant 0 : index
    %c0_14 = arith.constant 0 : index
    %28 = vector.load %arg4[%c0_12, %c0_13, %c0_14] : memref<1x8x256xbf16, #tpu.memory_space<vmem>>, vector<1x8x256xbf16>
    %29 = vector.shape_cast %28 : vector<1x8x256xbf16> to vector<8x256xbf16>
    %30 = vector.shape_cast %27 : vector<8x256xbf16> to vector<1x8x256xbf16>
    tpu.vector_store %arg4[%c0_12, %c0_13, %c0_14], %30 {strides = array<i32>} : memref<1x8x256xbf16, #tpu.memory_space<vmem>>, vector<1x8x256xbf16>,
    return
  }
  func.func @transform_0(%arg0: i32) -> (i32, i32, i32) {
    %c0_i32 = arith.constant 0 : i32
    %c0_i32_0 = arith.constant 0 : i32
    %c0_i32_1 = arith.constant 0 : i32
    return %arg0, %c0_i32, %c0_i32_0 : i32, i32, i32
  }
  func.func @transform_1(%arg0: i32) -> (i32, i32) {
    %c0_i32 = arith.constant 0 : i32
    %c0_i32_0 = arith.constant 0 : i32
    %c0_i32_1 = arith.constant 0 : i32
    return %c0_i32, %c0_i32_0 : i32, i32
  }
  func.func @transform_2(%arg0: i32) -> (i32, i32) {
    %c0_i32 = arith.constant 0 : i32
    %c0_i32_0 = arith.constant 0 : i32
    %c0_i32_1 = arith.constant 0 : i32
    return %c0_i32, %c0_i32_0 : i32, i32
  }
  func.func @transform_3(%arg0: i32) -> (i32, i32, i32) {
    %c0_i32 = arith.constant 0 : i32
    %c0_i32_0 = arith.constant 0 : i32
    %c0_i32_1 = arith.constant 0 : i32
    return %arg0, %c0_i32, %c0_i32_0 : i32, i32, i32
  }
}

module attributes {stable_mosaic.version = 11 : i64} {
  func.func @_conv_gemm_kernel(%arg0: i32, %arg1: memref<1x392x256xbf16, #tpu.memory_space<vmem>>, %arg2: memref<3x392xbf16, #tpu.memory_space<vmem>>, %arg3: memref<3x1xf32, #tpu.memory_space<vmem>>, %arg4: memref<1x3x256xf32, #tpu.memory_space<vmem>>) attributes {dimension_semantics = [#tpu.dimension_semantics<parallel>], iteration_bounds = array<i64: 2>, scalar_prefetch = 0 : i64, scratch_operands = 0 : i64, tpu.core_type = #tpu.core_type<tc>, window_params = [{transform_indices = @transform_0, window_bounds = array<i64: 1, 392, 256>}, {pipeline_mode = #tpu.pipeline_mode<synchronous>, transform_indices = @transform_1, window_bounds = array<i64: 3, 392>}, {pipeline_mode = #tpu.pipeline_mode<synchronous>, transform_indices = @transform_2, window_bounds = array<i64: 3, 1>}, {transform_indices = @transform_3, window_bounds = array<i64: 1, 3, 256>}]} {
    %c0 = arith.constant 0 : index
    %c0_0 = arith.constant 0 : index
    %0 = vector.load %arg2[%c0, %c0_0] : memref<3x392xbf16, #tpu.memory_space<vmem>>, vector<3x392xbf16>
    %c0_1 = arith.constant 0 : index
    %c0_2 = arith.constant 0 : index
    %c0_3 = arith.constant 0 : index
    %1 = vector.load %arg1[%c0_1, %c0_2, %c0_3] : memref<1x392x256xbf16, #tpu.memory_space<vmem>>, vector<1x392x256xbf16>
    %2 = vector.shape_cast %1 : vector<1x392x256xbf16> to vector<392x256xbf16>
    %cst = arith.constant dense<0.000000e+00> : vector<3x256xf32>
    %3 = tpu.matmul %0, %2, %cst {dimension_numbers = #tpu.dot_dimension_numbers<[1], [0], [0], [1], [0, 0, 1, 1], [], []>} : vector<3x392xbf16>, vector<392x256xbf16>, vector<3x256xf32> -> vector<3x256xf32>
    %c0_4 = arith.constant 0 : index
    %c0_5 = arith.constant 0 : index
    %4 = vector.load %arg3[%c0_4, %c0_5] : memref<3x1xf32, #tpu.memory_space<vmem>>, vector<3x1xf32>
    %5 = vector.broadcast %4 : vector<3x1xf32> to vector<3x256xf32>
    %6 = arith.addf %3, %5 : vector<3x256xf32>
    %7 = math.tanh %6 : vector<3x256xf32>
    %c0_6 = arith.constant 0 : index
    %c0_7 = arith.constant 0 : index
    %c0_8 = arith.constant 0 : index
    %8 = vector.load %arg4[%c0_6, %c0_7, %c0_8] : memref<1x3x256xf32, #tpu.memory_space<vmem>>, vector<1x3x256xf32>
    %9 = vector.shape_cast %8 : vector<1x3x256xf32> to vector<3x256xf32>
    %10 = vector.shape_cast %7 : vector<3x256xf32> to vector<1x3x256xf32>
    tpu.vector_store %arg4[%c0_6, %c0_7, %c0_8], %10 {strides = array<i32>} : memref<1x3x256xf32, #tpu.memory_space<vmem>>, vector<1x3x256xf32>,
    return
  }
  func.func @transform_0(%arg0: i32) -> (i32, i32, i32) {
    %c0_i32 = arith.constant 0 : i32
    %c0_i32_0 = arith.constant 0 : i32
    %c0_i32_1 = arith.constant 0 : i32
    return %arg0, %c0_i32, %c0_i32_0 : i32, i32, i32
  }
  func.func @transform_1(%arg0: i32) -> (i32, i32) {
    %c0_i32 = arith.constant 0 : i32
    %c0_i32_0 = arith.constant 0 : i32
    %c0_i32_1 = arith.constant 0 : i32
    return %c0_i32, %c0_i32_0 : i32, i32
  }
  func.func @transform_2(%arg0: i32) -> (i32, i32) {
    %c0_i32 = arith.constant 0 : i32
    %c0_i32_0 = arith.constant 0 : i32
    %c0_i32_1 = arith.constant 0 : i32
    return %c0_i32, %c0_i32_0 : i32, i32
  }
  func.func @transform_3(%arg0: i32) -> (i32, i32, i32) {
    %c0_i32 = arith.constant 0 : i32
    %c0_i32_0 = arith.constant 0 : i32
    %c0_i32_1 = arith.constant 0 : i32
    return %arg0, %c0_i32, %c0_i32_0 : i32, i32, i32
  }
}

</mosaic_0001>

<bundles_post_ra>
// kernel: generator_forward.7
= control target key start
LH: loop header
LB: loop body
LE: loop exit
PB: predicated region body
PF: predicated region fallthrough
CT: control target
= control target key end

     0   :  { %s529_s12 = smov 0   ;;  %s577_s0 = inlined_call_operand.vmem [shape: bf16[2,147,256], index: 0, kind: input, shape index: {}]   ;;  %s578_s1 = inlined_call_operand.vmem [shape: bf16[8,147], index: 1, kind: input, shape index: {}]   ;;  %s579_s2 = inlined_call_operand.vmem [shape: f32[8,1], index: 2, kind: input, shape index: {}]   ;;  %s580_s3 = inlined_call_operand.vmem [shape: bf16[2,8,256], index: 3, kind: output, shape index: {}]  }
   0x1 LB: > { %s420_s13 = sadd.s32 4294967295, %s505_s12   ;;  %p424_p0 = scmp.ge.s32.totalorder %s505_s12, 1  ;;  %s505_s12 = sphi %s529_s12, %s13_s12  }
   0x2   : > { %p137_p1 = scmp.lt.s32.totalorder %s505_s12, 3 }
   0x4   : > { %p138_p2 = pnand %p424_p0, %p137_p1 }
   0x5   : > { %p161_p3 = scmp.lt.s32.totalorder (!%p138_p2), %s420_s13, 1  ;;  %v172_v0 = vld [vmem:[%s578_s1] sm:$0xff] (!%p138_p2)  ;;  %vm299_vm0 = vcmask (!%p138_p2), 154624   ;;  %v507_v3 = vmov (!%p138_p2), 0   ;;  %vm303_vm1 = vcmask (!%p138_p2), 1040384   ;;  %vm304_vm2 = vcmask (!%p138_p2), 1041408  }
   0x6   : > { %141 = sbr.rel (%p138_p2) target bundleno = 278 (0x116), region = 32  ;;  %v429_v1 = vcombine.high (!%p138_p2), %v172_v0, %v172_v0  ;;  %v192_v2 = vld [vmem:[%s579_s2] sm:$0xff] (!%p138_p2)  ;;  %467 = vset.pattern.permute.xlu0 (!%p138_p2), %v507_v3  ;;  %v508_v20 = vmov (!%p138_p2), 65535   ;;  %v428_v30 = vcombine.low (!%p138_p2), %v172_v0, %v172_v0 }
   0x7   : > { %195 = vperm.xlu0 (!%p138_p2), %467, %v192_v2   ;;  %v305_v21 = vsel (!%p138_p2), %vm303_vm1, 4294967295, %v508_v20 }
   0x8   : > { %450 = vmatprep.mubr.msk.bf16.mxu0 (!%p138_p2), %vm299_vm0, %v429_v1  ;;  %v306_v25 = vsel (!%p138_p2), %vm304_vm2, %v305_v21, 0 }
   0xd   : > { %s582_s13 = smov (!%p161_p3, %s420_s13), 1 }
   0xe   : > { %s456_s18 = smul.u32 152, %s582_s13  ;;  %s454_s22 = sshll.u32 %s582_s13, 3 }
   0xf   : > { %s170_s25 = scalar_lea.vmem %s580_s3, %s454_s22 }
  0x10   : > { %s549_s21 = scalar_lea.vmem %s577_s0, %s456_s18 }
  0x11   : > { %v468_v4 = vld [vmem:[%s549_s21 + $0x4] ss:$8 sps:$4 sm:$0xff]   ;;  %v470_v5 = vld [vmem:[%s549_s21] ss:$8 sps:$4 sm:$0xff]   ;;  %v471_v6 = vld [vmem:[%s549_s21 + $0x14] ss:$8 sps:$4 sm:$0xff]  }
  0x12   : > { %313 = vmatprep.subr.bf16.mxu0 %v468_v4  ;;  %v473_v7 = vld [vmem:[%s549_s21 + $0x10] ss:$8 sps:$4 sm:$0xff]   ;;  %v474_v8 = vld [vmem:[%s549_s21 + $0x24] ss:$8 sps:$4 sm:$0xff]   ;;  %v476_v9 = vld [vmem:[%s549_s21 + $0x20] ss:$8 sps:$4 sm:$0xff]  }
  0x13   : > { %314 = vmatpush1.bf16.msra.mxu0 %v470_v5  ;;  %v477_v10 = vld [vmem:[%s549_s21 + $0x34] ss:$8 sps:$4 sm:$0xff]   ;;  %v479_v11 = vld [vmem:[%s549_s21 + $0x30] ss:$8 sps:$4 sm:$0xff]   ;;  %v480_v12 = vld [vmem:[%s549_s21 + $0x44] ss:$8 sps:$4 sm:$0xff]  }
  0x14   : > { %315 = vmatprep.subr.bf16.mxu0 %v471_v6  ;;  %v482_v13 = vld [vmem:[%s549_s21 + $0x40] ss:$8 sps:$4 sm:$0xff]   ;;  %v483_v14 = vld [vmem:[%s549_s21 + $0x54] ss:$8 sps:$4 sm:$0xff]   ;;  %v485_v15 = vld [vmem:[%s549_s21 + $0x50] ss:$8 sps:$4 sm:$0xff]  }
  0x15   : > { %v486_v16 = vld [vmem:[%s549_s21 + $0x64] ss:$8 sps:$4 sm:$0xff]   ;;  %v488_v17 = vld [vmem:[%s549_s21 + $0x60] ss:$8 sps:$4 sm:$0xff]   ;;  %v489_v18 = vld [vmem:[%s549_s21 + $0x74] ss:$8 sps:$4 sm:$0xff]  }
  0x16   : > { %v191_v19 = vld [vmem:[%s549_s21 + $0x90] sm:$0x33]  ;;  %v492_v23 = vld [vmem:[%s549_s21 + $0x84] ss:$8 sps:$4 sm:$0xff]   ;;  %v494_v26 = vld [vmem:[%s549_s21 + $0x80] ss:$8 sps:$4 sm:$0xff]  }
  0x17   : > { %316 = vmatpush1.bf16.msra.mxu0 %v473_v7  ;;  %v491_v22 = vld [vmem:[%s549_s21 + $0x70] ss:$8 sps:$4 sm:$0xff]   ;;  %v449_v24 = vcombine.high %v191_v19, %v191_v19  ;;  %v448_v27 = vcombine.low %v191_v19, %v191_v19 }
  0x18   : > { %317 = vmatprep.subr.bf16.mxu0 %v474_v8 }
  0x19   : > { %v311_v28 = vand.u32 %v449_v24, %v306_v25  ;;  %v308_v29 = vand.u32 %v448_v27, %v306_v25 }
  0x1b   : > { %318 = vmatpush1.bf16.msra.mxu0 %v476_v9 }
  0x1c   : > { %319 = vmatprep.subr.bf16.mxu0 %v477_v10 }
  0x1f   : > { %320 = vmatpush1.bf16.msra.mxu0 %v479_v11 }
  0x20   : > { %321 = vmatprep.subr.bf16.mxu0 %v480_v12 }
  0x23   : > { %322 = vmatpush1.bf16.msra.mxu0 %v482_v13 }
  0x24   : > { %323 = vmatprep.subr.bf16.mxu0 %v483_v14 }
  0x27   : > { %324 = vmatpush1.bf16.msra.mxu0 %v485_v15 }
  0x28   : > { %325 = vmatprep.subr.bf16.mxu0 %v486_v16 }
  0x2b   : > { %326 = vmatpush1.bf16.msra.mxu0 %v488_v17 }
  0x2c   : > { %327 = vmatprep.subr.bf16.mxu0 %v489_v18 }
  0x2f   : > { %328 = vmatpush1.bf16.msra.mxu0 %v491_v22 }
  0x30   : > { %329 = vmatprep.subr.bf16.mxu0 %v492_v23 }
  0x33   : > { %330 = vmatpush1.bf16.msra.mxu0 %v494_v26 }
  0x34   : > { %331 = vmatprep.subr.bf16.mxu0 %v311_v28 }
  0x37   : > { %332 = vmatpush1.bf16.msra.mxu0 %v308_v29 }
  0x3a   : > { %346 = vmatmul.mubr.bf16.vlgmr.msra.gmra.mrb[0].mxu0 %v428_v30 }
  0x86   : > { %v196_v31 = vpop.permute.xlu0 %195 }
 0x10d   : > { %v347_v32 = vpop.f32.mrb[0].mxu0 }
 0x10e   : > { %v348_v33 = vadd.f32 %v347_v32, %v196_v31  ;;  %v349_v34 = vpop.f32.mrb[1].mxu0 }
 0x10f   : > { %v350_v35 = vadd.f32 %v349_v34, %v196_v31  ;;  %v351_v36 = vpop.f32.mrb[2].mxu0 }
 0x110   : > { %v354_v37 = vmax.f32 %v348_v33, 0.0  ;;  %v352_v38 = vpop.f32.mrb[3].mxu0 }
 0x111   : > { %v355_v39 = vmax.f32 %v350_v35, 0.0 }
 0x113   : > { %v455_v40 = vpack.c.bf16 %v355_v39, %v354_v37 }
 0x115   : > { %364 = vst [vmem:[%s170_s25] sm:$0xff] %v455_v40 }
 0x116 PF: > { %s13_s12 = sadd.s32 1, %s505_s12  }
 0x117   : > { %p10_p4 = scmp.ge.s32.totalorder %s13_s12, 4  }
 0x119   :  { %12 = sbr.rel (!%p10_p4) target bundleno = 1 (0x1), region = 62 }

// kernel: generator_forward.8
= control target key start
LH: loop header
LB: loop body
LE: loop exit
PB: predicated region body
PF: predicated region fallthrough
CT: control target
= control target key end

     0   :  { %s468_s12 = smov 0   ;;  %s502_s0 = inlined_call_operand.vmem [shape: bf16[2,72,64], index: 0, kind: input, shape index: {}]   ;;  %s503_s1 = inlined_call_operand.vmem [shape: bf16[16,72], index: 1, kind: input, shape index: {}]   ;;  %s504_s2 = inlined_call_operand.vmem [shape: f32[16,1], index: 2, kind: input, shape index: {}]   ;;  %s505_s3 = inlined_call_operand.vmem [shape: bf16[2,16,64], index: 3, kind: output, shape index: {}]  }
   0x1 LB: > { %s372_s13 = sadd.s32 4294967295, %s443_s12   ;;  %p376_p0 = scmp.ge.s32.totalorder %s443_s12, 1  ;;  %s443_s12 = sphi %s468_s12, %s13_s12  }
   0x2   : > { %p137_p1 = scmp.lt.s32.totalorder %s443_s12, 3 }
   0x4   : > { %p138_p2 = pnand %p376_p0, %p137_p1 }
   0x5   : > { %p161_p3 = scmp.lt.s32.totalorder (!%p138_p2), %s372_s13, 1  ;;  %v445_v0 = vmov (!%p138_p2), 0.0   ;;  %vm446_vm0 = vmmov (!%p138_p2), 0   ;;  %v183_v1 = vld [vmem:[%s504_s2] sm:$0xff] (!%p138_p2)  ;;  %v447_v2 = vmov (!%p138_p2), 0   ;;  %v184_v3 = vld [vmem:[%s504_s2 + $0x8] sm:$0xff] (!%p138_p2) }
   0x6   : > { %141 = sbr.rel (%p138_p2) target bundleno = 569 (0x239), region = 32  ;;  %400 = vmatprep.subr.bf16.mxu0 (!%p138_p2), %v445_v0  ;;  %410 = vmatprep.mubr.msk.bf16.mxu0 (!%p138_p2), %vm446_vm0, %v445_v0  ;;  %vm231_vm1 = vcmask (!%p138_p2), 1043456   ;;  %v432_v10 = vld [vmem:[%s503_s1] sm:$0xff] (!%p138_p2)   ;;  %vm227_vm2 = vcmask (!%p138_p2), 588800   ;;  %vm276_vm3 = vcmask (!%p138_p2), 523264   ;;  %vm314_vm4 = vcmask (!%p138_p2), 519168  }
   0x7   : > { %426 = vset.pattern.permute.xlu0 (!%p138_p2), %v447_v2 }
   0x8   : > { %187 = vperm.xlu0 (!%p138_p2), %426, %v183_v1  }
   0xc   : > { %192 = vperm.xlu0 (!%p138_p2), %426, %v184_v3  }
   0xd   : > { %s507_s13 = smov (!%p161_p3, %s372_s13), 1 }
   0xe   : > { %s414_s16 = smul.u32 36, %s507_s13  ;;  %s391_s24 = sshll.u32 %s507_s13, 3 }
   0xf   : > { %s170_s27 = scalar_lea.vmem %s505_s3, %s391_s24 }
  0x10   : > { %s165_s21 = scalar_lea.vmem %s502_s0, %s414_s16 }
  0x11   : > { %v427_v4 = vld [vmem:[%s165_s21] sm:$0xff]   ;;  %v428_v5 = vld [vmem:[%s165_s21 + $0x8] sm:$0xff]   ;;  %v429_v6 = vld [vmem:[%s165_s21 + $0x10] sm:$0xff]  }
  0x12   : > { %401 = vmatpush3.bf16.msra.mxu0 %v427_v4  ;;  %v430_v7 = vld [vmem:[%s165_s21 + $0x18] sm:$0xff]   ;;  %v431_v8 = vld [vmem:[%s165_s21 + $0x20] ss:$0 sps:$4 sm:$0xff]  }
  0x13   : > { %402 = vmatprep.subr.bf16.mxu0 %v445_v0  ;;  %v233_v9 = vsel %vm231_vm1, %v431_v8, 0 }
  0x16   : > { %403 = vmatpush3.bf16.msra.mxu0 %v428_v5 }
  0x17   : > { %404 = vmatprep.subr.bf16.mxu0 %v445_v0 }
  0x1a   : > { %405 = vmatpush3.bf16.msra.mxu0 %v429_v6 }
  0x1b   : > { %406 = vmatprep.subr.bf16.mxu0 %v445_v0 }
  0x1e   : > { %407 = vmatpush3.bf16.msra.mxu0 %v430_v7 }
  0x1f   : > { %408 = vmatprep.subr.bf16.mxu0 %v445_v0 }
  0x22   : > { %409 = vmatpush3.bf16.msra.mxu0 %v233_v9 }
  0x25   : > { %411 = vmatmul.mubr.msk.bf16.vlgmr.msra.gmra.mrb[0].mxu0 %vm227_vm2, %v432_v10 }
  0x87   : > { %v188_v11 = vpop.permute.xlu0 %187 }
  0x8b   : > { %v193_v15 = vpop.permute.xlu0 %192 }
  0xf8   : > { %v269_v12 = vpop.f32.mrb[0].mxu0 }
  0xf9   : > { %v270_v13 = vadd.f32 %v269_v12, %v188_v11  ;;  %v412_v14 = vpop.f32.mrb[1].mxu0 }
  0xfa   : > { %v272_v16 = vpop.f32.mrb[2].mxu0 }
  0xfb   : > { %v273_v17 = vadd.f32 %v272_v16, %v193_v15  ;;  %v413_v18 = vpop.f32.mrb[3].mxu0  ;;  %v277_v19 = vsel %vm276_vm3, %v270_v13, 0.0 }
  0xfc   : > { %278 = vadd.xlane.f32.xlu1 %v277_v19 }
  0xfd   : > { %v280_v20 = vsel %vm276_vm3, %v273_v17, 0.0 }
 0x100   : > { %281 = vadd.xlane.f32.xlu1 %v280_v20 }
 0x189   : > { %v279_v21 = vpop.xlane.xlu1 %278 }
 0x18a   : > { %v284_v22 = vmul.f32 0.015625, %v279_v21 }
 0x18c   : > { %v286_v23 = vsub.f32 %v270_v13, %v284_v22 }
 0x18d   : > { %v282_v24 = vpop.xlane.xlu1 %281 }
 0x18e   : > { %v285_v25 = vmul.f32 0.015625, %v282_v24  ;;  %v288_v26 = vmul.f32 %v286_v23, %v286_v23 }
 0x190   : > { %v287_v27 = vsub.f32 %v273_v17, %v285_v25  ;;  %v290_v28 = vsel %vm276_vm3, %v288_v26, 0.0 }
 0x191   : > { %291 = vadd.xlane.f32.xlu0 %v290_v28 }
 0x192   : > { %v289_v29 = vmul.f32 %v287_v27, %v287_v27 }
 0x194   : > { %v293_v30 = vsel %vm276_vm3, %v289_v29, 0.0 }
 0x195   : > { %294 = vadd.xlane.f32.xlu1 %v293_v30 }
 0x21e   : > { %v292_v31 = vpop.xlane.xlu0 %291 }
 0x21f   : > { %v296_v32 = vmul.f32 0.015625, %v292_v31 }
 0x221   : > { %v298_v33 = vadd.f32 1e-05, %v296_v32 }
 0x222   : > { %v295_v34 = vpop.xlane.xlu1 %294 }
 0x223   : > { %433 = vrsqrt.f32 %v298_v33  ;;  %v297_v35 = vmul.f32 0.015625, %v295_v34 }
 0x225   : > { %v299_v36 = vadd.f32 1e-05, %v297_v35 }
 0x227   : > { %435 = vrsqrt.f32 %v299_v36 }
 0x22d   : > { %v434_v37 = vpop.eup %433 }
 0x22e   : > { %v302_v38 = vmul.f32 %v434_v37, %v286_v23 }
 0x230   : > { %v304_v39 = vmax.f32 %v302_v38, 0.0 }
 0x231   : > { %v436_v40 = vpop.eup %435 }
 0x232   : > { %v392_v41 = vpack.c.bf16 %v304_v39, %v304_v39  ;;  %v303_v42 = vmul.f32 %v436_v40, %v287_v27 }
 0x234   : > { %315 = vst.msk [vmem:[%s170_s27] sm:$0xf] %vm314_vm4, %v392_v41  ;;  %v305_v43 = vmax.f32 %v303_v42, 0.0 }
 0x236   : > { %v393_v44 = vpack.c.bf16 %v305_v43, %v305_v43 }
 0x238   : > { %316 = vst.msk [vmem:[%s170_s27 + $0x4] sm:$0xf] %vm314_vm4, %v393_v44 }
 0x239 PF: > { %s13_s12 = sadd.s32 1, %s443_s12  }
 0x23a   : > { %p10_p4 = scmp.ge.s32.totalorder %s13_s12, 4  }
 0x23c   :  { %12 = sbr.rel (!%p10_p4) target bundleno = 1 (0x1), region = 62 }

// kernel: generator_forward.9
= control target key start
LH: loop header
LB: loop body
LE: loop exit
PB: predicated region body
PF: predicated region fallthrough
CT: control target
= control target key end

     0   :  { %s595_s12 = smov 0   ;;  %s661_s0 = inlined_call_operand.vmem [shape: bf16[2,144,16], index: 0, kind: input, shape index: {}]   ;;  %s662_s1 = inlined_call_operand.vmem [shape: bf16[32,144], index: 1, kind: input, shape index: {}]   ;;  %s663_s2 = inlined_call_operand.vmem [shape: f32[32,1], index: 2, kind: input, shape index: {}]   ;;  %s664_s3 = inlined_call_operand.vmem [shape: bf16[2,32,16], index: 3, kind: output, shape index: {}]  }
   0x1 LB: > { %s479_s13 = sadd.s32 4294967295, %s572_s12   ;;  %p483_p0 = scmp.ge.s32.totalorder %s572_s12, 1  ;;  %s572_s12 = sphi %s595_s12, %s13_s12  }
   0x2   : > { %p137_p1 = scmp.lt.s32.totalorder %s572_s12, 3 }
   0x4   : > { %p138_p2 = pnand %p483_p0, %p137_p1 }
   0x5   : > { %p161_p3 = scmp.lt.s32.totalorder (!%p138_p2), %s479_s13, 1  ;;  %v574_v0 = vmov (!%p138_p2), 0   ;;  %v554_v1 = vld [vmem:[%s662_s1 + $0x4] ss:$8 sps:$4 sm:$0xff] (!%p138_p2)   ;;  %vm290_vm0 = vcmask (!%p138_p2), 130048   ;;  %v196_v4 = vld [vmem:[%s663_s2 + $0x10] sm:$0xff] (!%p138_p2) }
   0x6   : > { %141 = sbr.rel (%p138_p2) target bundleno = 589 (0x24d), region = 32  ;;  %297 = vmatprep.subr.bf16.mxu0 (!%p138_p2), %v574_v0  ;;  %513 = vmatprep.subr.bf16.mxu1 (!%p138_p2), %v574_v0  ;;  %v557_v2 = vld [vmem:[%s662_s1 + $0x14] ss:$8 sps:$4 sm:$0xff] (!%p138_p2)   ;;  %v194_v3 = vld [vmem:[%s663_s2] sm:$0xff] (!%p138_p2)  ;;  %v195_v5 = vld [vmem:[%s663_s2 + $0x8] sm:$0xff] (!%p138_p2)  ;;  %vm419_vm1 = vcmask (!%p138_p2), 125952  }
   0x7   : > { %541 = vset.pattern.permute.xlu0 (!%p138_p2), %v574_v0  ;;  %542 = vset.pattern.permute.xlu1 (!%p138_p2), %v574_v0  ;;  %v197_v6 = vld [vmem:[%s663_s2 + $0x18] sm:$0xff] (!%p138_p2)  ;;  %v552_v16 = vld [vmem:[%s662_s1] ss:$8 sps:$4 sm:$0xff] (!%p138_p2)  }
   0x8   : > { %500 = vmatprep.mubr.msk.bf16.mxu0 (!%p138_p2), %vm290_vm0, %v554_v1  ;;  %200 = vperm.xlu0 (!%p138_p2), %541, %v194_v3   ;;  %v555_v17 = vld [vmem:[%s662_s1 + $0x10] ss:$8 sps:$4 sm:$0xff] (!%p138_p2)  }
   0x9   : > { %501 = vmatprep.mubr.msk.bf16.mxu1 (!%p138_p2), %vm290_vm0, %v557_v2  ;;  %210 = vperm.xlu1 (!%p138_p2), %542, %v196_v4  }
   0xc   : > { %205 = vperm.xlu0 (!%p138_p2), %541, %v195_v5  }
   0xd   : > { %s666_s13 = smov (!%p161_p3, %s479_s13), 1  ;;  %215 = vperm.xlu1 %542, %v197_v6  }
   0xe   : > { %s531_s22 = smul.u32 72, %s666_s13  ;;  %s508_s7 = sshll.u32 %s666_s13, 4 }
   0xf   : > { %s170_s10 = scalar_lea.vmem %s664_s3, %s508_s7 }
  0x10   : > { %s629_s29 = scalar_lea.vmem %s661_s0, %s531_s22 }
  0x11   : > { %v543_v7 = vld [vmem:[%s629_s29] sm:$0xff]   ;;  %v544_v8 = vld [vmem:[%s629_s29 + $0x8] sm:$0xff]   ;;  %v545_v9 = vld [vmem:[%s629_s29 + $0x10] sm:$0xff]  }
  0x12   : > { %298 = vmatpush1.bf16.msra.mxu0 %v543_v7  ;;  %522 = vmatpush1.bf16.msra.mxu1 %v543_v7  ;;  %v546_v10 = vld [vmem:[%s629_s29 + $0x18] sm:$0xff]   ;;  %v547_v11 = vld [vmem:[%s629_s29 + $0x20] sm:$0xff]   ;;  %v548_v12 = vld [vmem:[%s629_s29 + $0x28] sm:$0xff]  }
  0x13   : > { %299 = vmatprep.subr.bf16.mxu0 %v574_v0  ;;  %514 = vmatprep.subr.bf16.mxu1 %v574_v0  ;;  %v549_v13 = vld [vmem:[%s629_s29 + $0x30] sm:$0xff]   ;;  %v550_v14 = vld [vmem:[%s629_s29 + $0x38] sm:$0xff]   ;;  %v551_v15 = vld [vmem:[%s629_s29 + $0x40] sm:$0xff]  }
  0x16   : > { %300 = vmatpush1.bf16.msra.mxu0 %v544_v8  ;;  %523 = vmatpush1.bf16.msra.mxu1 %v544_v8 }
  0x17   : > { %301 = vmatprep.subr.bf16.mxu0 %v574_v0  ;;  %515 = vmatprep.subr.bf16.mxu1 %v574_v0 }
  0x1a   : > { %302 = vmatpush1.bf16.msra.mxu0 %v545_v9  ;;  %524 = vmatpush1.bf16.msra.mxu1 %v545_v9 }
  0x1b   : > { %303 = vmatprep.subr.bf16.mxu0 %v574_v0  ;;  %516 = vmatprep.subr.bf16.mxu1 %v574_v0 }
  0x1e   : > { %304 = vmatpush1.bf16.msra.mxu0 %v546_v10  ;;  %525 = vmatpush1.bf16.msra.mxu1 %v546_v10 }
  0x1f   : > { %305 = vmatprep.subr.bf16.mxu0 %v574_v0  ;;  %517 = vmatprep.subr.bf16.mxu1 %v574_v0 }
  0x22   : > { %306 = vmatpush1.bf16.msra.mxu0 %v547_v11  ;;  %526 = vmatpush1.bf16.msra.mxu1 %v547_v11 }
  0x23   : > { %307 = vmatprep.subr.bf16.mxu0 %v574_v0  ;;  %518 = vmatprep.subr.bf16.mxu1 %v574_v0 }
  0x26   : > { %308 = vmatpush1.bf16.msra.mxu0 %v548_v12  ;;  %527 = vmatpush1.bf16.msra.mxu1 %v548_v12 }
  0x27   : > { %309 = vmatprep.subr.bf16.mxu0 %v574_v0  ;;  %519 = vmatprep.subr.bf16.mxu1 %v574_v0 }
  0x2a   : > { %310 = vmatpush1.bf16.msra.mxu0 %v549_v13  ;;  %528 = vmatpush1.bf16.msra.mxu1 %v549_v13 }
  0x2b   : > { %311 = vmatprep.subr.bf16.mxu0 %v574_v0  ;;  %520 = vmatprep.subr.bf16.mxu1 %v574_v0 }
  0x2e   : > { %312 = vmatpush1.bf16.msra.mxu0 %v550_v14  ;;  %529 = vmatpush1.bf16.msra.mxu1 %v550_v14 }
  0x2f   : > { %313 = vmatprep.subr.bf16.mxu0 %v574_v0  ;;  %521 = vmatprep.subr.bf16.mxu1 %v574_v0 }
  0x32   : > { %314 = vmatpush1.bf16.msra.mxu0 %v551_v15  ;;  %530 = vmatpush1.bf16.msra.mxu1 %v551_v15 }
  0x35   : > { %330 = vmatmul.mubr.bf16.vlgmr.msra.gmra.mrb[0].mxu0 %v552_v16  ;;  %338 = vmatmul.mubr.bf16.vlgmr.msra.gmra.mrb[0].mxu1 %v555_v17 }
  0x87   : > { %v201_v18 = vpop.permute.xlu0 %200 }
  0x88   : > { %v211_v19 = vpop.permute.xlu1 %210 }
  0x8b   : > { %v206_v20 = vpop.permute.xlu0 %205 }
  0x8c   : > { %v216_v33 = vpop.permute.xlu1 %215 }
 0x108   : > { %v331_v21 = vpop.f32.mrb[0].mxu0  ;;  %v339_v22 = vpop.f32.mrb[0].mxu1 }
 0x109   : > { %v332_v23 = vadd.f32 %v331_v21, %v201_v18  ;;  %v333_v24 = vpop.f32.mrb[1].mxu0  ;;  %v340_v25 = vadd.f32 %v339_v22, %v211_v19  ;;  %v341_v26 = vpop.f32.mrb[1].mxu1 }
 0x10a   : > { %v334_v27 = vpop.f32.mrb[2].mxu0  ;;  %v342_v28 = vpop.f32.mrb[2].mxu1 }
 0x10b   : > { %v335_v29 = vadd.f32 %v334_v27, %v206_v20  ;;  %v336_v30 = vpop.f32.mrb[3].mxu0  ;;  %v344_v31 = vpop.f32.mrb[3].mxu1  ;;  %v346_v32 = vsel %vm290_vm0, %v332_v23, 0.0  ;;  %v352_v35 = vsel %vm290_vm0, %v340_v25, 0.0  ;;  %v343_v36 = vadd.f32 %v342_v28, %v216_v33 }
 0x10c   : > { %347 = vadd.xlane.f32.xlu0 %v346_v32 }
 0x10d   : > { %v349_v34 = vsel %vm290_vm0, %v335_v29, 0.0  ;;  %v355_v37 = vsel %vm290_vm0, %v343_v36, 0.0 }
 0x10e   : > { %350 = vadd.xlane.f32.xlu1 %v349_v34 }
 0x110   : > { %353 = vadd.xlane.f32.xlu0 %v352_v35 }
 0x114   : > { %356 = vadd.xlane.f32.xlu0 %v355_v37 }
 0x199   : > { %v348_v38 = vpop.xlane.xlu0 %347 }
 0x19a   : > { %v359_v39 = vmul.f32 0.0625, %v348_v38 }
 0x19b   : > { %v351_v40 = vpop.xlane.xlu1 %350 }
 0x19c   : > { %v363_v41 = vsub.f32 %v332_v23, %v359_v39  ;;  %v360_v42 = vmul.f32 0.0625, %v351_v40 }
 0x19d   : > { %v354_v43 = vpop.xlane.xlu0 %353 }
 0x19e   : > { %v364_v44 = vsub.f32 %v335_v29, %v360_v42  ;;  %v361_v45 = vmul.f32 0.0625, %v354_v43  ;;  %v367_v46 = vmul.f32 %v363_v41, %v363_v41 }
 0x1a0   : > { %v365_v47 = vsub.f32 %v340_v25, %v361_v45  ;;  %v371_v48 = vsel %vm290_vm0, %v367_v46, 0.0  ;;  %v368_v49 = vmul.f32 %v364_v44, %v364_v44 }
 0x1a1   : > { %372 = vadd.xlane.f32.xlu1 %v371_v48  ;;  %v357_v50 = vpop.xlane.xlu0 %356 }
 0x1a2   : > { %v362_v51 = vmul.f32 0.0625, %v357_v50  ;;  %v374_v52 = vsel %vm290_vm0, %v368_v49, 0.0  ;;  %v369_v53 = vmul.f32 %v365_v47, %v365_v47 }
 0x1a3   : > { %375 = vadd.xlane.f32.xlu0 %v374_v52 }
 0x1a4   : > { %v366_v54 = vsub.f32 %v343_v36, %v362_v51  ;;  %v377_v55 = vsel %vm290_vm0, %v369_v53, 0.0 }
 0x1a5   : > { %378 = vadd.xlane.f32.xlu1 %v377_v55 }
 0x1a6   : > { %v370_v56 = vmul.f32 %v366_v54, %v366_v54 }
 0x1a8   : > { %v380_v57 = vsel %vm290_vm0, %v370_v56, 0.0 }
 0x1a9   : > { %381 = vadd.xlane.f32.xlu0 %v380_v57 }
 0x22e   : > { %v373_v58 = vpop.xlane.xlu1 %372 }
 0x22f   : > { %v383_v59 = vmul.f32 0.0625, %v373_v58 }
 0x230   : > { %v376_v60 = vpop.xlane.xlu0 %375 }
 0x231   : > { %v387_v61 = vadd.f32 1e-05, %v383_v59  ;;  %v384_v62 = vmul.f32 0.0625, %v376_v60 }
 0x232   : > { %v379_v63 = vpop.xlane.xlu1 %378 }
 0x233   : > { %558 = vrsqrt.f32 %v387_v61  ;;  %v388_v0 = vadd.f32 1e-05, %v384_v62  ;;  %v385_v1 = vmul.f32 0.0625, %v379_v63 }
 0x235   : > { %560 = vrsqrt.f32 %v388_v0  ;;  %v389_v2 = vadd.f32 1e-05, %v385_v1 }
 0x236   : > { %v382_v3 = vpop.xlane.xlu0 %381 }
 0x237   : > { %562 = vrsqrt.f32 %v389_v2  ;;  %v386_v4 = vmul.f32 0.0625, %v382_v3 }
 0x239   : > { %v390_v5 = vadd.f32 1e-05, %v386_v4 }
 0x23b   : > { %564 = vrsqrt.f32 %v390_v5 }
 0x23d   : > { %v559_v6 = vpop.eup %558 }
 0x23e   : > { %v395_v7 = vmul.f32 %v559_v6, %v363_v41 }
 0x23f   : > { %v561_v8 = vpop.eup %560 }
 0x240   : > { %v399_v9 = vmax.f32 %v395_v7, 0.0  ;;  %v396_v10 = vmul.f32 %v561_v8, %v364_v44 }
 0x241   : > { %v563_v11 = vpop.eup %562 }
 0x242   : > { %v509_v12 = vpack.c.bf16 %v399_v9, %v399_v9  ;;  %v400_v13 = vmax.f32 %v396_v10, 0.0  ;;  %v397_v14 = vmul.f32 %v563_v11, %v365_v47 }
 0x244   : > { %420 = vst.msk [vmem:[%s170_s10] sm:$0xf] %vm419_vm1, %v509_v12  ;;  %v510_v15 = vpack.c.bf16 %v400_v13, %v400_v13  ;;  %v401_v16 = vmax.f32 %v397_v14, 0.0 }
 0x245   : > { %v565_v17 = vpop.eup %564 }
 0x246   : > { %421 = vst.msk [vmem:[%s170_s10 + $0x4] sm:$0xf] %vm419_vm1, %v510_v15  ;;  %v511_v18 = vpack.c.bf16 %v401_v16, %v401_v16  ;;  %v398_v19 = vmul.f32 %v565_v17, %v366_v54 }
 0x248   : > { %422 = vst.msk [vmem:[%s170_s10 + $0x8] sm:$0xf] %vm419_vm1, %v511_v18  ;;  %v402_v20 = vmax.f32 %v398_v19, 0.0 }
 0x24a   : > { %v512_v21 = vpack.c.bf16 %v402_v20, %v402_v20 }
 0x24c   : > { %423 = vst.msk [vmem:[%s170_s10 + $0xc] sm:$0xf] %vm419_vm1, %v512_v21 }
 0x24d PF: > { %s13_s12 = sadd.s32 1, %s572_s12  }
 0x24e   : > { %p10_p4 = scmp.ge.s32.totalorder %s13_s12, 4  }
 0x250   :  { %12 = sbr.rel (!%p10_p4) target bundleno = 1 (0x1), region = 62 }

// kernel: generator_forward.10
= control target key start
LH: loop header
LB: loop body
LE: loop exit
PB: predicated region body
PF: predicated region fallthrough
CT: control target
= control target key end

     0   :  { %s2249_s15 = smov 0   ;;  %s2251_s16 = smov 0   ;;  %s2448_s0 = inlined_call_operand.vmem [shape: bf16[2,32,16], index: 0, kind: input, shape index: {}]   ;;  %s2449_s1 = inlined_call_operand.vmem [shape: bf16[9,16,16], index: 1, kind: input, shape index: {}]   ;;  %s2450_s2 = inlined_call_operand.vmem [shape: bf16[18,9,32,32], index: 2, kind: input, shape index: {}]   ;;  %s2451_s3 = inlined_call_operand.vmem [shape: f32[18,32,1], index: 3, kind: input, shape index: {}]   ;;  %s2452_s4 = inlined_call_operand.vmem [shape: bf16[2,32,16], index: 4, kind: output, shape index: {}]  }
   0x1   :  { %s2253_s17 = smov 0   ;;  %s2255_s18 = smov 0  }
   0x2   :  { %s2257_s19 = smov 0  }
   0x3 LB: > { %s23_s20 = sadd.s32 1, %s2213_s17  ;;  %s26_s21 = sadd.s32 1, %s2217_s18  ;;  %s2221_s19 = sphi %s2257_s19, %s14_s19   ;;  %s2217_s18 = sphi %s2255_s18, %s2456_s18   ;;  %s2213_s17 = sphi %s2253_s17, %s2455_s17   ;;  %s2209_s16 = sphi %s2251_s16, %s2454_s16   ;;  %s2205_s15 = sphi %s2249_s15, %s2453_s15  }
   0x4   : > { %p24_p0 = scmp.ge.s32.totalorder %s23_s20, 18  ;;  %p1734_p1 = scmp.ge.s32.totalorder %s2221_s19, 1 }
   0x5   : > { %p194_p2 = scmp.lt.s32.totalorder %s2221_s19, 37 }
   0x6   : > { %s2458_s20 = smov (%p24_p0, %s23_s20), 0  ;;  %s2460_s21 = smov (!%p24_p0, %s26_s21), %s2217_s18 }
   0x7   : > { %p195_p3 = pnand %p1734_p1, %p194_p2  ;;  %p28_p4 = scmp.ge.s32.totalorder %s2460_s21, 2 }
   0x8   : > { %p230_p5 = scmp.lt.s32.totalorder (!%p195_p3), %s2209_s16, 1  ;;  %p235_p6 = scmp.lt.s32.totalorder (!%p195_p3), %s2205_s15, 17 }
   0x9   : > { %s2462_s21 = smov (%p28_p4, %s2460_s21), 0  ;;  %198 = sbr.rel (%p195_p3) target bundleno = 1128 (0x468), region = 36 }
   0xa   : > { %p251_p7 = scmp.lt.s32.totalorder (!%p195_p3), %s2205_s15, 0  ;;  %s252_s22 = ssub.s32 (!%p195_p3), 0, %s2205_s15 }
   0xb   : > { %s1742_s25 = smin.u32 (!%p195_p3), %s2205_s15, %s252_s22  ;;  %p1745_p9 = scmp.ne.s32.totalorder (!%p195_p3), %s2205_s15, 0 }
   0xc   : > { %s254_s14 = sand.u32 (!%p195_p3), 1, %s1742_s25  }
  0x10   : > { %s2464_s16 = smov (!%p230_p5, %s2209_s16), 1  ;;  %vm276_vm0 = vcmask (!%p1745_p9), 130048  }
  0x11   : > { %s236_s23 = scalar_select %p235_p6, %s2205_s15, 17 }
  0x12   : > { %s1867_s24 = sshll.u32 %s2464_s16, 4  ;;  %s255_s16 = ssub.s32 0, %s254_s14 }
  0x13   : > { %s234_s28 = scalar_lea.vmem %s2448_s0, %s1867_s24  ;;  %s2104_s29 = smul.u32 144, %s236_s23 }
  0x14   : > { %s1868_s30 = sshll.u32 %s236_s23, 5  ;;  %s2292_s7 = scalar_lea.vmem %s2452_s4, %s1867_s24  ;;  %v1875_v0 = vld [vmem:[%s234_s28] sm:$0xff] (!%p1745_p9)   ;;  %v1882_v1 = vld [vmem:[%s234_s28 + $0x8] sm:$0xff] (!%p1745_p9)  }
  0x15   : > { %s2297_s10 = scalar_lea.vmem %s2450_s2, %s2104_s29  ;;  %s2302_s13 = scalar_lea.vmem %s2451_s3, %s1868_s30  ;;  %v1876_v2 = vunpack.c.l.bf16 (!%p1745_p9), %v1875_v0  ;;  %v1877_v3 = vunpack.c.h.bf16 (!%p1745_p9), %v1875_v0  ;;  %v1880_v4 = vunpack.c.l.bf16 (!%p1745_p9), %v1882_v1  ;;  %v1881_v5 = vunpack.c.h.bf16 (!%p1745_p9), %v1882_v1 }
  0x16   : > { %s2466_s16 = smov (!%p251_p7, %s255_s16), %s254_s14  ;;  %267 = sbr.rel (%p1745_p9) target bundleno = 29 (0x1d), region = 40 }
  0x17   : > { %p1744_p8 = scmp.lt.s32.totalorder %s2466_s16, 0  ;;  %s261_s22 = sadd.s32 2, %s2466_s16  ;;  %277 = vst.msk [vmem:[#allocation2] sm:$0xff] (!%p1745_p9), %vm276_vm0, %v1876_v2  ;;  %278 = vst.msk [vmem:[#allocation2 + $0x8] sm:$0xff] (!%p1745_p9), %vm276_vm0, %v1877_v3 }
  0x18   : > { %279 = vst.msk [vmem:[#allocation2 + $0x10] sm:$0xff] (!%p1745_p9), %vm276_vm0, %v1880_v4  ;;  %280 = vst.msk [vmem:[#allocation2 + $0x18] sm:$0xff] (!%p1745_p9), %vm276_vm0, %v1881_v5 }
  0x19   : > { %s2468_s22 = smov (!%p1744_p8, %s261_s22), %s2466_s16 }
  0x1d PF: > { %p1746_p10 = scmp.ne.s32.totalorder %s2468_s22, 0 }
  0x1e   : > { %v284_v6 = vld [vmem:[#allocation2] sm:$0xff] (!%p1746_p10)  ;;  %vm288_vm1 = vcmask (!%p1746_p10), 130048   ;;  %v285_v7 = vld [vmem:[#allocation2 + $0x8] sm:$0xff] (!%p1746_p10) }
  0x1f   : > { %283 = sbr.rel (%p1746_p10) target bundleno = 38 (0x26), region = 44  ;;  %v286_v8 = vld [vmem:[#allocation2 + $0x10] sm:$0xff] (!%p1746_p10)  ;;  %289 = vst.msk [vmem:[#allocation3] sm:$0xff] (!%p1746_p10), %vm288_vm1, %v284_v6  ;;  %290 = vst.msk [vmem:[#allocation3 + $0x8] sm:$0xff] (!%p1746_p10), %vm288_vm1, %v285_v7  ;;  %v287_v9 = vld [vmem:[#allocation2 + $0x18] sm:$0xff] (!%p1746_p10) }
  0x20   : > { %291 = vst.msk [vmem:[#allocation3 + $0x10] sm:$0xff] (!%p1746_p10), %vm288_vm1, %v286_v8  ;;  %292 = vst.msk [vmem:[#allocation3 + $0x18] sm:$0xff] (!%p1746_p10), %vm288_vm1, %v287_v9 }
  0x26 PF: > { %v2148_v10 = vld [vmem:[%s2449_s1 + $0x8] sm:$0xff]   ;;  %v293_v11 = vld [vmem:[#allocation2] sm:$0xff]  ;;  %vm307_vm2 = vcmask 130048   ;;  %v295_v13 = vld [vmem:[#allocation2 + $0x10] sm:$0xff]  ;;  %vm444_vm3 = vcmask 261120   ;;  %v2223_v44 = vmov 0  }
  0x27   : > { %v294_v12 = vld [vmem:[#allocation2 + $0x8] sm:$0xff]  ;;  %1952 = vmatprep.subr.bf16.mxu1 %v2148_v10  ;;  %v296_v15 = vld [vmem:[#allocation2 + $0x18] sm:$0xff]  ;;  %v2149_v17 = vld [vmem:[%s2449_s1] sm:$0xff]   ;;  %2147 = vset.pattern.permute.xlu1 %v2223_v44 }
  0x28   : > { %v297_v14 = vpack.c.bf16 %v294_v12, %v293_v11  ;;  %1953 = vmatpush3.bf16.msra.mxu1 %v2148_v10  ;;  %v298_v16 = vpack.c.bf16 %v296_v15, %v295_v13  ;;  %1946 = vmatprep.subr.bf16.mxu0 %v2149_v17  ;;  %v2150_v18 = vld [vmem:[%s2297_s10 + $0x10] sm:$0xff]   ;;  %v2151_v26 = vld [vmem:[%s2297_s10 + $0x18] sm:$0xff]   ;;  %v2154_v28 = vld [vmem:[%s2449_s1 + $0x20] sm:$0xff]  }
  0x29   : > { %1947 = vmatpush3.bf16.msra.mxu0 %v2149_v17  ;;  %v2152_v25 = vld [vmem:[%s2449_s1 + $0x10] sm:$0xff]   ;;  %v2153_v27 = vld [vmem:[%s2449_s1 + $0x18] sm:$0xff]   ;;  %v2155_v29 = vld [vmem:[%s2449_s1 + $0x28] sm:$0xff]   ;;  %2146 = vset.pattern.permute.xlu0 %v2223_v44 }
  0x2a   : > { %1954 = vmatprep.mubr.msk.bf16.mxu1 %vm307_vm2, %v297_v14  ;;  %1948 = vmatprep.mubr.msk.bf16.mxu0 %vm307_vm2, %v297_v14  ;;  %v2156_v30 = vld [vmem:[%s2449_s1 + $0x30] sm:$0xff]   ;;  %v2157_v31 = vld [vmem:[%s2449_s1 + $0x38] sm:$0xff]   ;;  %v2158_v32 = vld [vmem:[%s2449_s1 + $0x40] sm:$0xff]  }
  0x2b   : > { %1955 = vmatmul.mubr.msk.bf16.vlgmr.msra.gmra.mrb[0].mxu1 %vm307_vm2, %v298_v16  ;;  %v2159_v39 = vld [vmem:[%s2297_s10] sm:$0xff]   ;;  %v2160_v40 = vld [vmem:[%s2297_s10 + $0x8] sm:$0xff]   ;;  %v1505_v42 = vld [vmem:[%s2302_s13 + $0x10] sm:$0xff] }
  0x2c   : > { %1949 = vmatmul.mubr.msk.bf16.vlgmr.msra.gmra.mrb[0].mxu0 %vm307_vm2, %v298_v16  ;;  %1962 = vmatprep.mubr.msk.bf16.mxu1 %vm444_vm3, %v2150_v18  ;;  %v2161_v41 = vld [vmem:[%s2297_s10 + $0x20] sm:$0xff]   ;;  %v1506_v45 = vld [vmem:[%s2302_s13 + $0x18] sm:$0xff]  ;;  %v1504_v46 = vld [vmem:[%s2302_s13 + $0x8] sm:$0xff] }
  0x2d   : > { %1970 = vmatprep.mubr.msk.bf16.mxu0 %vm444_vm3, %v2159_v39  ;;  %v1503_v43 = vld [vmem:[%s2302_s13] sm:$0xff]  ;;  %1519 = vperm.xlu1 %2147, %v1505_v42   ;;  %v2162_v60 = vld [vmem:[%s2297_s10 + $0x28] sm:$0xff]   ;;  %v2163_v63 = vld [vmem:[%s2297_s10 + $0x30] sm:$0xff]  }
  0x2e   : > { %1509 = vperm.xlu0 %2146, %v1503_v43   ;;  %v2164_v7 = vld [vmem:[%s2297_s10 + $0x38] sm:$0xff]   ;;  %v2165_v8 = vld [vmem:[%s2297_s10 + $0x40] sm:$0xff]   ;;  %v2166_v17 = vld [vmem:[%s2297_s10 + $0x48] sm:$0xff]  }
  0x2f   : > { %v2172_v39 = vld [vmem:[%s2297_s10 + $0x78] sm:$0xff]  }
  0x31   : > { %1524 = vperm.xlu1 %2147, %v1506_v45  }
  0x32   : > { %1514 = vperm.xlu0 %2146, %v1504_v46  }
  0xac   : > { %v1520_v44 = vpop.permute.xlu1 %1519 }
  0xad   : > { %v1510_v42 = vpop.permute.xlu0 %1509 }
  0xfe   : > { %v1956_v19 = vpop.f32.mrb[0].mxu1 }
  0xff   : > { %v412_v20 = vpop.f32.mrb[1].mxu1  ;;  %v1950_v33 = vpop.f32.mrb[0].mxu0 }
 0x100   : > { %v1957_v21 = vpop.f32.mrb[2].mxu1  ;;  %v348_v34 = vpop.f32.mrb[1].mxu0 }
 0x101   : > { %v433_v22 = vpack.c.bf16 %v1957_v21, %v1956_v19  ;;  %v415_v23 = vpop.f32.mrb[3].mxu1  ;;  %v1951_v35 = vpop.f32.mrb[2].mxu0  ;;  %v2167_v21 = vld [vmem:[%s2297_s10 + $0x50] sm:$0xff]  }
 0x102   : > { %v432_v24 = vpack.c.bf16 %v415_v23, %v412_v20  ;;  %v368_v36 = vpack.c.bf16 %v1951_v35, %v1950_v33  ;;  %v351_v37 = vpop.f32.mrb[3].mxu0 }
 0x103   : > { %v367_v38 = vpack.c.bf16 %v351_v37, %v348_v34  ;;  %v2170_v37 = vld [vmem:[%s2297_s10 + $0x68] sm:$0xff]  }
 0x104   : > { %1958 = vmatprep.subr.bf16.mxu1 %v432_v24 }
 0x105   : > { %1959 = vmatpush3.bf16.msra.mxu1 %v432_v24  ;;  %1966 = vmatprep.subr.bf16.mxu0 %v367_v38 }
 0x106   : > { %1960 = vmatprep.subr.bf16.mxu1 %v433_v22  ;;  %1967 = vmatpush3.bf16.msra.mxu0 %v367_v38  ;;  %v2171_v38 = vld [vmem:[%s2297_s10 + $0x70] sm:$0xff]  }
 0x107   : > { %1968 = vmatprep.subr.bf16.mxu0 %v368_v36 }
 0x109   : > { %1961 = vmatpush3.bf16.msra.mxu1 %v433_v22 }
 0x10a   : > { %1974 = vmatprep.subr.bf16.mxu1 %v2152_v25  ;;  %1969 = vmatpush3.bf16.msra.mxu0 %v368_v36 }
 0x10c   : > { %1963 = vmatmul.mubr.msk.bf16.vlgmr.msra.gmra.mrb[4].mxu1 %vm444_vm3, %v2151_v26 }
 0x10d   : > { %1975 = vmatpush3.bf16.msra.mxu1 %v2152_v25  ;;  %1976 = vmatprep.mubr.msk.bf16.mxu1 %vm307_vm2, %v297_v14 }
 0x10e   : > { %1988 = vmatprep.subr.bf16.mxu1 %v2153_v27  ;;  %1971 = vmatmul.mubr.msk.bf16.vlgmr.msra.gmra.mrb[4].mxu0 %vm444_vm3, %v2160_v40  ;;  %v2173_v40 = vld [vmem:[%s2297_s10 + $0x80] sm:$0xff]  }
 0x10f   : > { %1984 = vmatprep.mubr.msk.bf16.mxu0 %vm444_vm3, %v2161_v41  ;;  %v2174_v41 = vld [vmem:[%s2297_s10 + $0x88] sm:$0xff]  }
 0x114   : > { %1977 = vmatmul.mubr.msk.bf16.vlgmr.msra.gmra.mrb[8].mxu1 %vm307_vm2, %v298_v16 }
 0x115   : > { %1989 = vmatpush3.bf16.msra.mxu1 %v2153_v27  ;;  %1990 = vmatprep.mubr.msk.bf16.mxu1 %vm307_vm2, %v297_v14 }
 0x116   : > { %2002 = vmatprep.subr.bf16.mxu1 %v2154_v28 }
 0x11c   : > { %1991 = vmatmul.mubr.msk.bf16.vlgmr.msra.gmra.mrb[12].mxu1 %vm307_vm2, %v298_v16 }
 0x11d   : > { %2003 = vmatpush3.bf16.msra.mxu1 %v2154_v28  ;;  %2004 = vmatprep.mubr.msk.bf16.mxu1 %vm307_vm2, %v297_v14 }
 0x11e   : > { %2016 = vmatprep.subr.bf16.mxu1 %v2155_v29 }
 0x124   : > { %2005 = vmatmul.mubr.msk.bf16.vlgmr.msra.gmra.mrb[16].mxu1 %vm307_vm2, %v298_v16 }
 0x125   : > { %2017 = vmatpush3.bf16.msra.mxu1 %v2155_v29  ;;  %2018 = vmatprep.mubr.msk.bf16.mxu1 %vm307_vm2, %v297_v14  ;;  %v2168_v29 = vld [vmem:[%s2297_s10 + $0x58] sm:$0xff]  }
 0x126   : > { %2030 = vmatprep.subr.bf16.mxu1 %v2156_v30 }
 0x12c   : > { %2019 = vmatmul.mubr.msk.bf16.vlgmr.msra.gmra.mrb[20].mxu1 %vm307_vm2, %v298_v16 }
 0x12d   : > { %2031 = vmatpush3.bf16.msra.mxu1 %v2156_v30  ;;  %2032 = vmatprep.mubr.msk.bf16.mxu1 %vm307_vm2, %v297_v14  ;;  %v2169_v30 = vld [vmem:[%s2297_s10 + $0x60] sm:$0xff]  }
 0x12e   : > { %2044 = vmatprep.subr.bf16.mxu1 %v2157_v31 }
 0x134   : > { %2033 = vmatmul.mubr.msk.bf16.vlgmr.msra.gmra.mrb[24].mxu1 %vm307_vm2, %v298_v16 }
 0x135   : > { %2045 = vmatpush3.bf16.msra.mxu1 %v2157_v31  ;;  %2046 = vmatprep.mubr.msk.bf16.mxu1 %vm307_vm2, %v297_v14 }
 0x136   : > { %2058 = vmatprep.subr.bf16.mxu1 %v2158_v32 }
 0x13c   : > { %2047 = vmatmul.mubr.msk.bf16.vlgmr.msra.gmra.mrb[28].mxu1 %vm307_vm2, %v298_v16 }
 0x13d   : > { %2059 = vmatpush3.bf16.msra.mxu1 %v2158_v32  ;;  %2060 = vmatprep.mubr.msk.bf16.mxu1 %vm307_vm2, %v297_v14 }
 0x144   : > { %2061 = vmatmul.mubr.msk.bf16.vlgmr.msra.gmra.mrb[32].mxu1 %vm307_vm2, %v298_v16 }
 0x1df   : > { %v2371_v47 = vpop.f32.mrb[4].mxu1 }
 0x1e0   : > { %v2373_v48 = vpop.f32.mrb[5].mxu1 }
 0x1e1   : > { %v2375_v49 = vpop.f32.mrb[6].mxu1 }
 0x1e2   : > { %v2377_v50 = vpop.f32.mrb[7].mxu1 }
 0x1e7   : > { %v1978_v51 = vpop.f32.mrb[8].mxu1 }
 0x1e8   : > { %v608_v52 = vpop.f32.mrb[9].mxu1 }
 0x1e9   : > { %v1979_v53 = vpop.f32.mrb[10].mxu1 }
 0x1ea   : > { %v629_v54 = vpack.c.bf16 %v1979_v53, %v1978_v51  ;;  %v611_v55 = vpop.f32.mrb[11].mxu1 }
 0x1eb   : > { %v628_v56 = vpack.c.bf16 %v611_v55, %v608_v52 }
 0x1ed   : > { %1980 = vmatprep.subr.bf16.mxu0 %v628_v56 }
 0x1ee   : > { %1981 = vmatpush3.bf16.msra.mxu0 %v628_v56 }
 0x1ef   : > { %1982 = vmatprep.subr.bf16.mxu0 %v629_v54  ;;  %v1992_v57 = vpop.f32.mrb[12].mxu1 }
 0x1f0   : > { %v742_v58 = vpop.f32.mrb[13].mxu1 }
 0x1f1   : > { %v1993_v59 = vpop.f32.mrb[14].mxu1 }
 0x1f2   : > { %v763_v61 = vpack.c.bf16 %v1993_v59, %v1992_v57  ;;  %1983 = vmatpush3.bf16.msra.mxu0 %v629_v54  ;;  %v745_v62 = vpop.f32.mrb[15].mxu1  ;;  %v1515_v57 = vpop.permute.xlu0 %1514 }
 0x1f3   : > { %v762_v0 = vpack.c.bf16 %v745_v62, %v742_v58 }
 0x1f5   : > { %1985 = vmatmul.mubr.msk.bf16.vlgmr.msra.gmra.mrb[4].mxu0 %vm444_vm3, %v2162_v60  ;;  %1994 = vmatprep.subr.bf16.mxu0 %v762_v0 }
 0x1f6   : > { %1995 = vmatpush3.bf16.msra.mxu0 %v762_v0  ;;  %1998 = vmatprep.mubr.msk.bf16.mxu0 %vm444_vm3, %v2163_v63 }
 0x1f7   : > { %1996 = vmatprep.subr.bf16.mxu0 %v763_v61  ;;  %v2006_v1 = vpop.f32.mrb[16].mxu1 }
 0x1f8   : > { %v876_v2 = vpop.f32.mrb[17].mxu1 }
 0x1f9   : > { %v2007_v3 = vpop.f32.mrb[18].mxu1 }
 0x1fa   : > { %1997 = vmatpush3.bf16.msra.mxu0 %v763_v61  ;;  %v897_v4 = vpack.c.bf16 %v2007_v3, %v2006_v1  ;;  %v879_v5 = vpop.f32.mrb[19].mxu1  ;;  %v1525_v61 = vpop.permute.xlu1 %1524 }
 0x1fb   : > { %v896_v6 = vpack.c.bf16 %v879_v5, %v876_v2 }
 0x1fd   : > { %2008 = vmatprep.subr.bf16.mxu0 %v896_v6 }
 0x1ff   : > { %v2020_v9 = vpop.f32.mrb[20].mxu1 }
 0x200   : > { %v1010_v10 = vpop.f32.mrb[21].mxu1 }
 0x201   : > { %1999 = vmatmul.mubr.msk.bf16.vlgmr.msra.gmra.mrb[4].mxu0 %vm444_vm3, %v2164_v7  ;;  %v2021_v11 = vpop.f32.mrb[22].mxu1 }
 0x202   : > { %2009 = vmatpush3.bf16.msra.mxu0 %v896_v6  ;;  %v1031_v12 = vpack.c.bf16 %v2021_v11, %v2020_v9  ;;  %v1013_v13 = vpop.f32.mrb[23].mxu1  ;;  %2012 = vmatprep.mubr.msk.bf16.mxu0 %vm444_vm3, %v2165_v8 }
 0x203   : > { %2010 = vmatprep.subr.bf16.mxu0 %v897_v4  ;;  %v1030_v14 = vpack.c.bf16 %v1013_v13, %v1010_v10 }
 0x206   : > { %2011 = vmatpush3.bf16.msra.mxu0 %v897_v4 }
 0x207   : > { %2022 = vmatprep.subr.bf16.mxu0 %v1030_v14  ;;  %v2034_v15 = vpop.f32.mrb[24].mxu1 }
 0x208   : > { %v1144_v16 = vpop.f32.mrb[25].mxu1 }
 0x209   : > { %v2035_v18 = vpop.f32.mrb[26].mxu1 }
 0x20a   : > { %v1165_v19 = vpack.c.bf16 %v2035_v18, %v2034_v15  ;;  %v1147_v20 = vpop.f32.mrb[27].mxu1 }
 0x20b   : > { %v1164_v22 = vpack.c.bf16 %v1147_v20, %v1144_v16 }
 0x20d   : > { %2013 = vmatmul.mubr.msk.bf16.vlgmr.msra.gmra.mrb[4].mxu0 %vm444_vm3, %v2166_v17 }
 0x20e   : > { %2023 = vmatpush3.bf16.msra.mxu0 %v1030_v14  ;;  %2026 = vmatprep.mubr.msk.bf16.mxu0 %vm444_vm3, %v2167_v21 }
 0x20f   : > { %2024 = vmatprep.subr.bf16.mxu0 %v1031_v12  ;;  %v2048_v23 = vpop.f32.mrb[28].mxu1 }
 0x210   : > { %v1278_v24 = vpop.f32.mrb[29].mxu1 }
 0x211   : > { %v2049_v25 = vpop.f32.mrb[30].mxu1 }
 0x212   : > { %2025 = vmatpush3.bf16.msra.mxu0 %v1031_v12  ;;  %v1299_v26 = vpack.c.bf16 %v2049_v25, %v2048_v23  ;;  %v1281_v27 = vpop.f32.mrb[31].mxu1 }
 0x213   : > { %2036 = vmatprep.subr.bf16.mxu0 %v1164_v22  ;;  %v1298_v28 = vpack.c.bf16 %v1281_v27, %v1278_v24 }
 0x217   : > { %v2062_v31 = vpop.f32.mrb[32].mxu1 }
 0x218   : > { %v1412_v32 = vpop.f32.mrb[33].mxu1 }
 0x219   : > { %2027 = vmatmul.mubr.msk.bf16.vlgmr.msra.gmra.mrb[4].mxu0 %vm444_vm3, %v2168_v29  ;;  %v2063_v33 = vpop.f32.mrb[34].mxu1 }
 0x21a   : > { %2037 = vmatpush3.bf16.msra.mxu0 %v1164_v22  ;;  %2040 = vmatprep.mubr.msk.bf16.mxu0 %vm444_vm3, %v2169_v30  ;;  %v1433_v34 = vpack.c.bf16 %v2063_v33, %v2062_v31  ;;  %v1415_v35 = vpop.f32.mrb[35].mxu1 }
 0x21b   : > { %2038 = vmatprep.subr.bf16.mxu0 %v1165_v19  ;;  %v1432_v36 = vpack.c.bf16 %v1415_v35, %v1412_v32 }
 0x21e   : > { %2039 = vmatpush3.bf16.msra.mxu0 %v1165_v19 }
 0x21f   : > { %2050 = vmatprep.subr.bf16.mxu0 %v1298_v28 }
 0x225   : > { %2041 = vmatmul.mubr.msk.bf16.vlgmr.msra.gmra.mrb[4].mxu0 %vm444_vm3, %v2170_v37 }
 0x226   : > { %2051 = vmatpush3.bf16.msra.mxu0 %v1298_v28  ;;  %2054 = vmatprep.mubr.msk.bf16.mxu0 %vm444_vm3, %v2171_v38 }
 0x227   : > { %2052 = vmatprep.subr.bf16.mxu0 %v1299_v26 }
 0x22a   : > { %2053 = vmatpush3.bf16.msra.mxu0 %v1299_v26 }
 0x22b   : > { %2064 = vmatprep.subr.bf16.mxu0 %v1432_v36 }
 0x231   : > { %2055 = vmatmul.mubr.msk.bf16.vlgmr.msra.gmra.mrb[4].mxu0 %vm444_vm3, %v2172_v39 }
 0x232   : > { %2065 = vmatpush3.bf16.msra.mxu0 %v1432_v36  ;;  %2068 = vmatprep.mubr.msk.bf16.mxu0 %vm444_vm3, %v2173_v40 }
 0x233   : > { %2066 = vmatprep.subr.bf16.mxu0 %v1433_v34 }
 0x236   : > { %2067 = vmatpush3.bf16.msra.mxu0 %v1433_v34 }
 0x23d   : > { %2069 = vmatmul.mubr.msk.bf16.vlgmr.msra.gmra.mrb[4].mxu0 %vm444_vm3, %v2174_v41 }
 0x310   : > { %v2070_v43 = vpop.f32.mrb[4].mxu0 }
 0x311   : > { %v2072_v45 = vadd.f32 %v2070_v43, %v2371_v47  ;;  %v1484_v46 = vpop.f32.mrb[5].mxu0 }
 0x312   : > { %v2073_v51 = vadd.f32 %v1484_v46, %v2373_v48  ;;  %v2071_v52 = vpop.f32.mrb[6].mxu0 }
 0x313   : > { %v2074_v53 = vadd.f32 %v2071_v52, %v2375_v49  ;;  %v1487_v54 = vpop.f32.mrb[7].mxu0  ;;  %v1529_v60 = vadd.f32 %v2072_v45, %v1520_v44 }
 0x314   : > { %v2075_v55 = vadd.f32 %v1487_v54, %v2377_v50  ;;  %v1527_v56 = vadd.f32 %v2073_v51, %v1510_v42 }
 0x315   : > { %v1530_v47 = vadd.f32 %v2074_v53, %v1525_v61  ;;  %v1537_v48 = vsel %vm307_vm2, %v1529_v60, 0.0 }
 0x316   : > { %v1528_v58 = vadd.f32 %v2075_v55, %v1515_v57  ;;  %v1531_v59 = vsel %vm307_vm2, %v1527_v56, 0.0 }
 0x317   : > { %1532 = vadd.xlane.f32.xlu0 %v1531_v59  ;;  %v1540_v49 = vsel %vm307_vm2, %v1530_v47, 0.0 }
 0x318   : > { %v1534_v62 = vsel %vm307_vm2, %v1528_v58, 0.0 }
 0x319   : > { %1535 = vadd.xlane.f32.xlu1 %v1534_v62 }
 0x31b   : > { %1538 = vadd.xlane.f32.xlu0 %v1537_v48 }
 0x31f   : > { %1541 = vadd.xlane.f32.xlu0 %v1540_v49 }
 0x3a4   : > { %v1533_v63 = vpop.xlane.xlu0 %1532 }
 0x3a5   : > { %v1544_v50 = vmul.f32 0.0625, %v1533_v63 }
 0x3a6   : > { %v1536_v0 = vpop.xlane.xlu1 %1535 }
 0x3a7   : > { %v1548_v1 = vsub.f32 %v1527_v56, %v1544_v50  ;;  %v1545_v2 = vmul.f32 0.0625, %v1536_v0 }
 0x3a8   : > { %v1539_v3 = vpop.xlane.xlu0 %1538 }
 0x3a9   : > { %v1549_v4 = vsub.f32 %v1528_v58, %v1545_v2  ;;  %v1546_v5 = vmul.f32 0.0625, %v1539_v3  ;;  %v1552_v6 = vmul.f32 %v1548_v1, %v1548_v1 }
 0x3ab   : > { %v1550_v7 = vsub.f32 %v1529_v60, %v1546_v5  ;;  %v1556_v8 = vsel %vm307_vm2, %v1552_v6, 0.0  ;;  %v1553_v9 = vmul.f32 %v1549_v4, %v1549_v4 }
 0x3ac   : > { %v1542_v10 = vpop.xlane.xlu0 %1541  ;;  %1557 = vadd.xlane.f32.xlu1 %v1556_v8 }
 0x3ad   : > { %v1547_v11 = vmul.f32 0.0625, %v1542_v10  ;;  %v1559_v12 = vsel %vm307_vm2, %v1553_v9, 0.0  ;;  %v1554_v13 = vmul.f32 %v1550_v7, %v1550_v7 }
 0x3ae   : > { %1560 = vadd.xlane.f32.xlu0 %v1559_v12 }
 0x3af   : > { %v1551_v14 = vsub.f32 %v1530_v47, %v1547_v11  ;;  %v1562_v15 = vsel %vm307_vm2, %v1554_v13, 0.0 }
 0x3b0   : > { %1563 = vadd.xlane.f32.xlu1 %v1562_v15 }
 0x3b1   : > { %v1555_v16 = vmul.f32 %v1551_v14, %v1551_v14 }
 0x3b3   : > { %v1565_v17 = vsel %vm307_vm2, %v1555_v16, 0.0 }
 0x3b4   : > { %1566 = vadd.xlane.f32.xlu0 %v1565_v17 }
 0x439   : > { %v1558_v18 = vpop.xlane.xlu1 %1557 }
 0x43a   : > { %v1568_v19 = vmul.f32 0.0625, %v1558_v18 }
 0x43b   : > { %v1561_v20 = vpop.xlane.xlu0 %1560 }
 0x43c   : > { %v1572_v21 = vadd.f32 1e-05, %v1568_v19  ;;  %v1569_v22 = vmul.f32 0.0625, %v1561_v20 }
 0x43d   : > { %v1564_v23 = vpop.xlane.xlu1 %1563 }
 0x43e   : > { %2175 = vrsqrt.f32 %v1572_v21  ;;  %v1573_v24 = vadd.f32 1e-05, %v1569_v22  ;;  %v1570_v25 = vmul.f32 0.0625, %v1564_v23 }
 0x440   : > { %2177 = vrsqrt.f32 %v1573_v24  ;;  %v1574_v26 = vadd.f32 1e-05, %v1570_v25 }
 0x441   : > { %v1567_v27 = vpop.xlane.xlu0 %1566 }
 0x442   : > { %2179 = vrsqrt.f32 %v1574_v26  ;;  %v1571_v28 = vmul.f32 0.0625, %v1567_v27 }
 0x444   : > { %v1575_v29 = vadd.f32 1e-05, %v1571_v28 }
 0x446   : > { %2181 = vrsqrt.f32 %v1575_v29 }
 0x448   : > { %v2176_v30 = vpop.eup %2175 }
 0x449   : > { %v1580_v31 = vmul.f32 %v2176_v30, %v1548_v1 }
 0x44a   : > { %v2178_v32 = vpop.eup %2177 }
 0x44b   : > { %v1581_v33 = vmul.f32 %v2178_v32, %v1549_v4  ;;  %1586 = sbr.rel (%p1746_p10) target bundleno = 1110 (0x456), region = 48  ;;  %v1587_v38 = vmax.f32 (!%p1746_p10), %v1580_v31, 0.0 }
 0x44c   : > { %v2180_v34 = vpop.eup %2179 }
 0x44d   : > { %v1582_v35 = vmul.f32 %v2180_v34, %v1550_v7  ;;  %v1588_v39 = vmax.f32 (!%p1746_p10), %v1581_v33, 0.0  ;;  %1591 = vst.msk [vmem:[#allocation2] sm:$0xff] (!%p1746_p10), %vm307_vm2, %v1587_v38 }
 0x44f   : > { %v1589_v40 = vmax.f32 (!%p1746_p10), %v1582_v35, 0.0  ;;  %1592 = vst.msk [vmem:[#allocation2 + $0x8] sm:$0xff] (!%p1746_p10), %vm307_vm2, %v1588_v39 }
 0x450   : > { %v2182_v36 = vpop.eup %2181 }
 0x451   : > { %v1583_v37 = vmul.f32 %v2182_v36, %v1551_v14  ;;  %1593 = vst.msk [vmem:[#allocation2 + $0x10] sm:$0xff] (!%p1746_p10), %vm307_vm2, %v1589_v40 }
 0x453   : > { %v1590_v41 = vmax.f32 %v1583_v37, 0.0 }
 0x455   : > { %1594 = vst.msk [vmem:[#allocation2 + $0x18] sm:$0xff] %vm307_vm2, %v1590_v41 }
 0x456 PF: > { %p1859_p11 = scmp.eq.s32.totalorder %s2468_s22, 0 }
 0x457   : > { %v1599_v42 = vld [vmem:[#allocation3] sm:$0xff] (!%p1859_p11)  ;;  %v1600_v43 = vld [vmem:[#allocation3 + $0x8] sm:$0xff] (!%p1859_p11)  ;;  %v1601_v44 = vld [vmem:[#allocation3 + $0x10] sm:$0xff] (!%p1859_p11) }
 0x458   : > { %1598 = sbr.rel (%p1859_p11) target bundleno = 1119 (0x45f), region = 52  ;;  %v1603_v45 = vadd.f32 (!%p1859_p11), %v1599_v42, %v1580_v31  ;;  %v1604_v46 = vadd.f32 (!%p1859_p11), %v1600_v43, %v1581_v33  ;;  %v1605_v51 = vadd.f32 (!%p1859_p11), %v1601_v44, %v1582_v35  ;;  %v1602_v52 = vld [vmem:[#allocation3 + $0x18] sm:$0xff] (!%p1859_p11) }
 0x459   : > { %v1606_v53 = vadd.f32 (!%p1859_p11), %v1602_v52, %v1583_v37 }
 0x45a   : > { %1607 = vst.msk [vmem:[#allocation2] sm:$0xff] (!%p1859_p11), %vm307_vm2, %v1603_v45  ;;  %1608 = vst.msk [vmem:[#allocation2 + $0x8] sm:$0xff] (!%p1859_p11), %vm307_vm2, %v1604_v46 }
 0x45b   : > { %1609 = vst.msk [vmem:[#allocation2 + $0x10] sm:$0xff] (!%p1859_p11), %vm307_vm2, %v1605_v51  ;;  %1610 = vst.msk [vmem:[#allocation2 + $0x18] sm:$0xff] (!%p1859_p11), %vm307_vm2, %v1606_v53 }
 0x45f PF: > { %p1860_p12 = scmp.ne.s32.totalorder %s2205_s15, 17 }
 0x460   : > { %vm1635_vm4 = vcmask (!%p1860_p12), 125952  }
 0x461   : > { %1614 = sbr.rel (%p1860_p12) target bundleno = 1128 (0x468), region = 56  ;;  %v1615_v54 = vld [vmem:[#allocation2] sm:$0xff] (!%p1860_p12)  ;;  %v1616_v55 = vld [vmem:[#allocation2 + $0x8] sm:$0xff] (!%p1860_p12) }
 0x462   : > { %v1617_v56 = vld [vmem:[#allocation2 + $0x10] sm:$0xff] (!%p1860_p12)  ;;  %v1870_v57 = vpack.c.bf16 (!%p1860_p12), %v1615_v54, %v1615_v54  ;;  %v1871_v58 = vpack.c.bf16 (!%p1860_p12), %v1616_v55, %v1616_v55  ;;  %v1618_v60 = vld [vmem:[#allocation2 + $0x18] sm:$0xff] (!%p1860_p12) }
 0x463   : > { %v1872_v59 = vpack.c.bf16 (!%p1860_p12), %v1617_v56, %v1617_v56  ;;  %v1873_v61 = vpack.c.bf16 (!%p1860_p12), %v1618_v60, %v1618_v60 }
 0x464   : > { %1636 = vst.msk [vmem:[%s2292_s7] sm:$0xf] (!%p1860_p12), %vm1635_vm4, %v1870_v57  ;;  %1637 = vst.msk [vmem:[%s2292_s7 + $0x4] sm:$0xf] (!%p1860_p12), %vm1635_vm4, %v1871_v58 }
 0x465   : > { %1638 = vst.msk [vmem:[%s2292_s7 + $0x8] sm:$0xf] (!%p1860_p12), %vm1635_vm4, %v1872_v59  ;;  %1639 = vst.msk [vmem:[%s2292_s7 + $0xc] sm:$0xf] (!%p1860_p12), %vm1635_vm4, %v1873_v61 }
 0x468 PF: > { %s14_s19 = sadd.s32 1, %s2221_s19   ;;  %s2453_s15 = smov %s2213_s17 }
 0x469   : > { %p11_p13 = scmp.ge.s32.totalorder %s14_s19, 38   ;;  %s2454_s16 = smov %s2217_s18 }
 0x46a   : > { %s2455_s17 = smov %s2458_s20  ;;  %s2456_s18 = smov %s2462_s21 }
 0x46b   :  { %13 = sbr.rel (!%p11_p13) target bundleno = 3 (0x3), region = 108 }

// kernel: generator_forward.11
= control target key start
LH: loop header
LB: loop body
LE: loop exit
PB: predicated region body
PF: predicated region fallthrough
CT: control target
= control target key end

     0   :  { %s669_s12 = smov 0   ;;  %s729_s0 = inlined_call_operand.vmem [shape: bf16[2,288,64], index: 0, kind: input, shape index: {}]   ;;  %s730_s1 = inlined_call_operand.vmem [shape: bf16[16,288], index: 1, kind: input, shape index: {}]   ;;  %s731_s2 = inlined_call_operand.vmem [shape: f32[16,1], index: 2, kind: input, shape index: {}]   ;;  %s732_s3 = inlined_call_operand.vmem [shape: bf16[2,16,64], index: 3, kind: output, shape index: {}]  }
   0x1 LB: > { %s529_s13 = sadd.s32 4294967295, %s644_s12   ;;  %p533_p0 = scmp.ge.s32.totalorder %s644_s12, 1  ;;  %s644_s12 = sphi %s669_s12, %s13_s12  }
   0x2   : > { %p137_p1 = scmp.lt.s32.totalorder %s644_s12, 3 }
   0x4   : > { %p138_p2 = pnand %p533_p0, %p137_p1 }
   0x5   : > { %p161_p3 = scmp.lt.s32.totalorder (!%p138_p2), %s529_s13, 1  ;;  %v646_v0 = vmov (!%p138_p2), 0.0   ;;  %v631_v1 = vld [vmem:[%s730_s1 + $0x4] ss:$12 sps:$4 sm:$0xff] (!%p138_p2)   ;;  %vm647_vm0 = vmmov (!%p138_p2), 0   ;;  %v648_v2 = vmov (!%p138_p2), 0  }
   0x6   : > { %141 = sbr.rel (%p138_p2) target bundleno = 587 (0x24b), region = 32  ;;  %591 = vmatprep.subr.bf16.mxu1 (!%p138_p2), %v646_v0  ;;  %595 = vmatprep.mubr.msk.bf16.mxu1 (!%p138_p2), %vm647_vm0, %v646_v0  ;;  %v212_v3 = vld [vmem:[%s731_s2] sm:$0xff] (!%p138_p2)  ;;  %v213_v4 = vld [vmem:[%s731_s2 + $0x8] sm:$0xff] (!%p138_p2)  ;;  %vm347_vm1 = vcmask (!%p138_p2), 261120   ;;  %vm433_vm2 = vcmask (!%p138_p2), 523264   ;;  %vm471_vm3 = vcmask (!%p138_p2), 519168  }
   0x7   : > { %383 = vmatprep.mubr.bf16.mxu0 (!%p138_p2), %v631_v1  ;;  %611 = vset.pattern.permute.xlu0 (!%p138_p2), %v648_v2  ;;  %v633_v19 = vld [vmem:[%s730_s1 + $0x8] ss:$12 sps:$4 sm:$0xff] (!%p138_p2)   ;;  %v629_v24 = vld [vmem:[%s730_s1] ss:$12 sps:$4 sm:$0xff] (!%p138_p2)  }
   0x8   : > { %216 = vperm.xlu0 (!%p138_p2), %611, %v212_v3  }
   0xc   : > { %221 = vperm.xlu0 (!%p138_p2), %611, %v213_v4  }
   0xd   : > { %s734_s13 = smov (!%p161_p3, %s529_s13), 1 }
   0xe   : > { %s599_s18 = smul.u32 144, %s734_s13  ;;  %s563_s28 = sshll.u32 %s734_s13, 3 }
   0xf   : > { %s170_s4 = scalar_lea.vmem %s732_s3, %s563_s28 }
  0x10   : > { %s692_s23 = scalar_lea.vmem %s729_s0, %s599_s18 }
  0x11   : > { %v612_v5 = vld [vmem:[%s692_s23 + $0x40] sm:$0xff]   ;;  %v614_v7 = vld [vmem:[%s692_s23 + $0x48] sm:$0xff]   ;;  %v616_v9 = vld [vmem:[%s692_s23 + $0x50] sm:$0xff]  }
  0x12   : > { %v613_v6 = vld [vmem:[%s692_s23] sm:$0xff]   ;;  %566 = vmatprep.subr.bf16.mxu0 %v612_v5  ;;  %v615_v8 = vld [vmem:[%s692_s23 + $0x8] sm:$0xff]   ;;  %v617_v10 = vld [vmem:[%s692_s23 + $0x10] sm:$0xff]  }
  0x13   : > { %567 = vmatpush3.bf16.msra.mxu0 %v613_v6  ;;  %v618_v11 = vld [vmem:[%s692_s23 + $0x58] sm:$0xff]   ;;  %v620_v13 = vld [vmem:[%s692_s23 + $0x60] sm:$0xff]   ;;  %v622_v16 = vld [vmem:[%s692_s23 + $0x68] sm:$0xff]  }
  0x14   : > { %568 = vmatprep.subr.bf16.mxu0 %v614_v7  ;;  %v619_v12 = vld [vmem:[%s692_s23 + $0x18] sm:$0xff]   ;;  %v626_v14 = vld [vmem:[%s692_s23 + $0x80] sm:$0xff]   ;;  %v632_v17 = vld [vmem:[%s692_s23 + $0x88] sm:$0xff]  }
  0x15   : > { %v621_v15 = vld [vmem:[%s692_s23 + $0x20] sm:$0xff]   ;;  %592 = vmatpush3.bf16.msra.mxu1 %v626_v14  ;;  %v623_v18 = vld [vmem:[%s692_s23 + $0x28] sm:$0xff]   ;;  %v624_v20 = vld [vmem:[%s692_s23 + $0x70] sm:$0xff]  }
  0x16   : > { %593 = vmatprep.subr.bf16.mxu1 %v646_v0  ;;  %v625_v21 = vld [vmem:[%s692_s23 + $0x30] sm:$0xff]   ;;  %v627_v22 = vld [vmem:[%s692_s23 + $0x78] sm:$0xff]  }
  0x17   : > { %569 = vmatpush3.bf16.msra.mxu0 %v615_v8  ;;  %v628_v23 = vld [vmem:[%s692_s23 + $0x38] sm:$0xff]  }
  0x18   : > { %570 = vmatprep.subr.bf16.mxu0 %v616_v9 }
  0x19   : > { %594 = vmatpush3.bf16.msra.mxu1 %v632_v17 }
  0x1b   : > { %571 = vmatpush3.bf16.msra.mxu0 %v617_v10 }
  0x1c   : > { %572 = vmatprep.subr.bf16.mxu0 %v618_v11  ;;  %596 = vmatmul.mubr.msk.bf16.vlgmr.msra.gmra.mrb[0].mxu1 %vm347_vm1, %v633_v19 }
  0x1f   : > { %573 = vmatpush3.bf16.msra.mxu0 %v619_v12 }
  0x20   : > { %574 = vmatprep.subr.bf16.mxu0 %v620_v13 }
  0x23   : > { %575 = vmatpush3.bf16.msra.mxu0 %v621_v15 }
  0x24   : > { %576 = vmatprep.subr.bf16.mxu0 %v622_v16 }
  0x27   : > { %577 = vmatpush3.bf16.msra.mxu0 %v623_v18 }
  0x28   : > { %578 = vmatprep.subr.bf16.mxu0 %v624_v20 }
  0x2b   : > { %579 = vmatpush3.bf16.msra.mxu0 %v625_v21 }
  0x2c   : > { %580 = vmatprep.subr.bf16.mxu0 %v627_v22 }
  0x2f   : > { %581 = vmatpush3.bf16.msra.mxu0 %v628_v23 }
  0x32   : > { %384 = vmatmul.mubr.bf16.vlgmr.msra.gmra.mrb[0].mxu0 %v629_v24 }
  0x87   : > { %v217_v29 = vpop.permute.xlu0 %216 }
  0x8b   : > { %v222_v37 = vpop.permute.xlu0 %221 }
  0xef   : > { %v426_v25 = vpop.f32.mrb[0].mxu1 }
  0xf0   : > { %v597_v26 = vpop.f32.mrb[1].mxu1 }
  0xf1   : > { %v429_v27 = vpop.f32.mrb[2].mxu1 }
  0xf2   : > { %v598_v28 = vpop.f32.mrb[3].mxu1 }
 0x105   : > { %v582_v30 = vpop.f32.mrb[0].mxu0 }
 0x106   : > { %v583_v31 = vpop.f32.mrb[1].mxu0 }
 0x107   : > { %v584_v32 = vadd.f32 %v583_v31, %v582_v30  ;;  %v585_v33 = vpop.f32.mrb[2].mxu0 }
 0x108   : > { %v586_v34 = vpop.f32.mrb[3].mxu0 }
 0x109   : > { %v386_v35 = vadd.f32 %v584_v32, %v217_v29  ;;  %v587_v36 = vadd.f32 %v586_v34, %v585_v33 }
 0x10b   : > { %v427_v38 = vadd.f32 %v426_v25, %v386_v35  ;;  %v389_v39 = vadd.f32 %v587_v36, %v222_v37 }
 0x10d   : > { %v430_v40 = vadd.f32 %v429_v27, %v389_v39  ;;  %v434_v41 = vsel %vm433_vm2, %v427_v38, 0.0 }
 0x10e   : > { %435 = vadd.xlane.f32.xlu1 %v434_v41 }
 0x10f   : > { %v437_v42 = vsel %vm433_vm2, %v430_v40, 0.0 }
 0x112   : > { %438 = vadd.xlane.f32.xlu1 %v437_v42 }
 0x19b   : > { %v436_v43 = vpop.xlane.xlu1 %435 }
 0x19c   : > { %v441_v44 = vmul.f32 0.015625, %v436_v43 }
 0x19e   : > { %v443_v45 = vsub.f32 %v427_v38, %v441_v44 }
 0x19f   : > { %v439_v46 = vpop.xlane.xlu1 %438 }
 0x1a0   : > { %v442_v47 = vmul.f32 0.015625, %v439_v46  ;;  %v445_v48 = vmul.f32 %v443_v45, %v443_v45 }
 0x1a2   : > { %v444_v49 = vsub.f32 %v430_v40, %v442_v47  ;;  %v447_v50 = vsel %vm433_vm2, %v445_v48, 0.0 }
 0x1a3   : > { %448 = vadd.xlane.f32.xlu0 %v447_v50 }
 0x1a4   : > { %v446_v51 = vmul.f32 %v444_v49, %v444_v49 }
 0x1a6   : > { %v450_v52 = vsel %vm433_vm2, %v446_v51, 0.0 }
 0x1a7   : > { %451 = vadd.xlane.f32.xlu1 %v450_v52 }
 0x230   : > { %v449_v53 = vpop.xlane.xlu0 %448 }
 0x231   : > { %v453_v54 = vmul.f32 0.015625, %v449_v53 }
 0x233   : > { %v455_v55 = vadd.f32 1e-05, %v453_v54 }
 0x234   : > { %v452_v56 = vpop.xlane.xlu1 %451 }
 0x235   : > { %634 = vrsqrt.f32 %v455_v55  ;;  %v454_v57 = vmul.f32 0.015625, %v452_v56 }
 0x237   : > { %v456_v58 = vadd.f32 1e-05, %v454_v57 }
 0x239   : > { %636 = vrsqrt.f32 %v456_v58 }
 0x23f   : > { %v635_v59 = vpop.eup %634 }
 0x240   : > { %v459_v60 = vmul.f32 %v635_v59, %v443_v45 }
 0x242   : > { %v461_v61 = vmax.f32 %v459_v60, 0.0 }
 0x243   : > { %v637_v62 = vpop.eup %636 }
 0x244   : > { %v564_v63 = vpack.c.bf16 %v461_v61, %v461_v61  ;;  %v460_v0 = vmul.f32 %v637_v62, %v444_v49 }
 0x246   : > { %472 = vst.msk [vmem:[%s170_s4] sm:$0xf] %vm471_vm3, %v564_v63  ;;  %v462_v1 = vmax.f32 %v460_v0, 0.0 }
 0x248   : > { %v565_v2 = vpack.c.bf16 %v462_v1, %v462_v1 }
 0x24a   : > { %473 = vst.msk [vmem:[%s170_s4 + $0x4] sm:$0xf] %vm471_vm3, %v565_v2 }
 0x24b PF: > { %s13_s12 = sadd.s32 1, %s644_s12  }
 0x24c   : > { %p10_p4 = scmp.ge.s32.totalorder %s13_s12, 4  }
 0x24e   :  { %12 = sbr.rel (!%p10_p4) target bundleno = 1 (0x1), region = 62 }

// kernel: generator_forward.12
= control target key start
LH: loop header
LB: loop body
LE: loop exit
PB: predicated region body
PF: predicated region fallthrough
CT: control target
= control target key end

     0   :  { %s526_s12 = smov 0   ;;  %s573_s0 = inlined_call_operand.vmem [shape: bf16[2,144,256], index: 0, kind: input, shape index: {}]   ;;  %s574_s1 = inlined_call_operand.vmem [shape: bf16[8,144], index: 1, kind: input, shape index: {}]   ;;  %s575_s2 = inlined_call_operand.vmem [shape: f32[8,1], index: 2, kind: input, shape index: {}]   ;;  %s576_s3 = inlined_call_operand.vmem [shape: bf16[2,8,256], index: 3, kind: output, shape index: {}]  }
   0x1 LB: > { %s421_s13 = sadd.s32 4294967295, %s503_s12   ;;  %p425_p0 = scmp.ge.s32.totalorder %s503_s12, 1  ;;  %s503_s12 = sphi %s526_s12, %s13_s12  }
   0x2   : > { %p137_p1 = scmp.lt.s32.totalorder %s503_s12, 3 }
   0x4   : > { %p138_p2 = pnand %p425_p0, %p137_p1 }
   0x5   : > { %p161_p3 = scmp.lt.s32.totalorder (!%p138_p2), %s421_s13, 1  ;;  %v172_v0 = vld [vmem:[%s574_s1] sm:$0xff] (!%p138_p2)  ;;  %vm293_vm0 = vcmask (!%p138_p2), 130048   ;;  %v505_v3 = vmov (!%p138_p2), 0  }
   0x6   : > { %141 = sbr.rel (%p138_p2) target bundleno = 585 (0x249), region = 32  ;;  %v191_v1 = vld [vmem:[%s575_s2] sm:$0xff] (!%p138_p2)  ;;  %v430_v2 = vcombine.high (!%p138_p2), %v172_v0, %v172_v0  ;;  %465 = vset.pattern.permute.xlu0 (!%p138_p2), %v505_v3  ;;  %v429_v22 = vcombine.low (!%p138_p2), %v172_v0, %v172_v0 }
   0x7   : > { %194 = vperm.xlu0 (!%p138_p2), %465, %v191_v1  }
   0x8   : > { %449 = vmatprep.mubr.msk.bf16.mxu0 (!%p138_p2), %vm293_vm0, %v430_v2 }
   0xd   : > { %s578_s13 = smov (!%p161_p3, %s421_s13), 1 }
   0xe   : > { %s455_s18 = smul.u32 144, %s578_s13  ;;  %s453_s22 = sshll.u32 %s578_s13, 3 }
   0xf   : > { %s170_s25 = scalar_lea.vmem %s576_s3, %s453_s22 }
  0x10   : > { %s546_s21 = scalar_lea.vmem %s573_s0, %s455_s18 }
  0x11   : > { %v466_v4 = vld [vmem:[%s546_s21 + $0x4] ss:$8 sps:$4 sm:$0xff]   ;;  %v468_v5 = vld [vmem:[%s546_s21] ss:$8 sps:$4 sm:$0xff]   ;;  %v469_v6 = vld [vmem:[%s546_s21 + $0x14] ss:$8 sps:$4 sm:$0xff]  }
  0x12   : > { %297 = vmatprep.subr.bf16.mxu0 %v466_v4  ;;  %v471_v7 = vld [vmem:[%s546_s21 + $0x10] ss:$8 sps:$4 sm:$0xff]   ;;  %v472_v8 = vld [vmem:[%s546_s21 + $0x24] ss:$8 sps:$4 sm:$0xff]   ;;  %v474_v9 = vld [vmem:[%s546_s21 + $0x20] ss:$8 sps:$4 sm:$0xff]  }
  0x13   : > { %298 = vmatpush1.bf16.msra.mxu0 %v468_v5  ;;  %v475_v10 = vld [vmem:[%s546_s21 + $0x34] ss:$8 sps:$4 sm:$0xff]   ;;  %v477_v11 = vld [vmem:[%s546_s21 + $0x30] ss:$8 sps:$4 sm:$0xff]   ;;  %v478_v12 = vld [vmem:[%s546_s21 + $0x44] ss:$8 sps:$4 sm:$0xff]  }
  0x14   : > { %299 = vmatprep.subr.bf16.mxu0 %v469_v6  ;;  %v480_v13 = vld [vmem:[%s546_s21 + $0x40] ss:$8 sps:$4 sm:$0xff]   ;;  %v481_v14 = vld [vmem:[%s546_s21 + $0x54] ss:$8 sps:$4 sm:$0xff]   ;;  %v483_v15 = vld [vmem:[%s546_s21 + $0x50] ss:$8 sps:$4 sm:$0xff]  }
  0x15   : > { %v484_v16 = vld [vmem:[%s546_s21 + $0x64] ss:$8 sps:$4 sm:$0xff]   ;;  %v486_v17 = vld [vmem:[%s546_s21 + $0x60] ss:$8 sps:$4 sm:$0xff]   ;;  %v487_v18 = vld [vmem:[%s546_s21 + $0x74] ss:$8 sps:$4 sm:$0xff]  }
  0x16   : > { %v489_v19 = vld [vmem:[%s546_s21 + $0x70] ss:$8 sps:$4 sm:$0xff]   ;;  %v490_v20 = vld [vmem:[%s546_s21 + $0x84] ss:$8 sps:$4 sm:$0xff]   ;;  %v492_v21 = vld [vmem:[%s546_s21 + $0x80] ss:$8 sps:$4 sm:$0xff]  }
  0x17   : > { %300 = vmatpush1.bf16.msra.mxu0 %v471_v7 }
  0x18   : > { %301 = vmatprep.subr.bf16.mxu0 %v472_v8 }
  0x1b   : > { %302 = vmatpush1.bf16.msra.mxu0 %v474_v9 }
  0x1c   : > { %303 = vmatprep.subr.bf16.mxu0 %v475_v10 }
  0x1f   : > { %304 = vmatpush1.bf16.msra.mxu0 %v477_v11 }
  0x20   : > { %305 = vmatprep.subr.bf16.mxu0 %v478_v12 }
  0x23   : > { %306 = vmatpush1.bf16.msra.mxu0 %v480_v13 }
  0x24   : > { %307 = vmatprep.subr.bf16.mxu0 %v481_v14 }
  0x27   : > { %308 = vmatpush1.bf16.msra.mxu0 %v483_v15 }
  0x28   : > { %309 = vmatprep.subr.bf16.mxu0 %v484_v16 }
  0x2b   : > { %310 = vmatpush1.bf16.msra.mxu0 %v486_v17 }
  0x2c   : > { %311 = vmatprep.subr.bf16.mxu0 %v487_v18 }
  0x2f   : > { %312 = vmatpush1.bf16.msra.mxu0 %v489_v19 }
  0x30   : > { %313 = vmatprep.subr.bf16.mxu0 %v490_v20 }
  0x33   : > { %314 = vmatpush1.bf16.msra.mxu0 %v492_v21 }
  0x36   : > { %330 = vmatmul.mubr.bf16.vlgmr.msra.gmra.mrb[0].mxu0 %v429_v22 }
  0x86   : > { %v195_v23 = vpop.permute.xlu0 %194 }
 0x109   : > { %v331_v24 = vpop.f32.mrb[0].mxu0 }
 0x10a   : > { %v332_v25 = vadd.f32 %v331_v24, %v195_v23  ;;  %v333_v26 = vpop.f32.mrb[1].mxu0 }
 0x10b   : > { %v334_v27 = vadd.f32 %v333_v26, %v195_v23  ;;  %v335_v28 = vpop.f32.mrb[2].mxu0 }
 0x10c   : > { %v336_v29 = vpop.f32.mrb[3].mxu0 }
 0x10d   : > { %v338_v30 = vadd.f32 %v334_v27, %v332_v25 }
 0x10f   : > { %339 = vadd.xlane.f32.xlu0 %v338_v30 }
 0x19c   : > { %v340_v31 = vpop.xlane.xlu0 %339 }
 0x19d   : > { %v342_v32 = vmul.f32 0.00390625, %v340_v31 }
 0x19f   : > { %v343_v33 = vsub.f32 %v332_v25, %v342_v32  ;;  %v344_v34 = vsub.f32 %v334_v27, %v342_v32 }
 0x1a1   : > { %v345_v35 = vmul.f32 %v343_v33, %v343_v33  ;;  %v346_v36 = vmul.f32 %v344_v34, %v344_v34 }
 0x1a3   : > { %v347_v37 = vadd.f32 %v346_v36, %v345_v35 }
 0x1a5   : > { %348 = vadd.xlane.f32.xlu1 %v347_v37 }
 0x232   : > { %v349_v38 = vpop.xlane.xlu1 %348 }
 0x233   : > { %v350_v39 = vmul.f32 0.00390625, %v349_v38 }
 0x235   : > { %v351_v40 = vadd.f32 1e-05, %v350_v39 }
 0x237   : > { %495 = vrsqrt.f32 %v351_v40 }
 0x241   : > { %v496_v41 = vpop.eup %495 }
 0x242   : > { %v353_v42 = vmul.f32 %v496_v41, %v343_v33  ;;  %v354_v43 = vmul.f32 %v496_v41, %v344_v34 }
 0x244   : > { %v355_v44 = vmax.f32 %v353_v42, 0.0  ;;  %v356_v45 = vmax.f32 %v354_v43, 0.0 }
 0x246   : > { %v454_v46 = vpack.c.bf16 %v356_v45, %v355_v44 }
 0x248   : > { %365 = vst [vmem:[%s170_s25] sm:$0xff] %v454_v46 }
 0x249 PF: > { %s13_s12 = sadd.s32 1, %s503_s12  }
 0x24a   : > { %p10_p4 = scmp.ge.s32.totalorder %s13_s12, 4  }
 0x24c   :  { %12 = sbr.rel (!%p10_p4) target bundleno = 1 (0x1), region = 62 }

// kernel: generator_forward.13
= control target key start
LH: loop header
LB: loop body
LE: loop exit
PB: predicated region body
PF: predicated region fallthrough
CT: control target
= control target key end

     0   :  { %s837_s12 = smov 0   ;;  %s925_s0 = inlined_call_operand.vmem [shape: bf16[2,392,256], index: 0, kind: input, shape index: {}]   ;;  %s926_s1 = inlined_call_operand.vmem [shape: bf16[3,392], index: 1, kind: input, shape index: {}]   ;;  %s927_s2 = inlined_call_operand.vmem [shape: f32[3,1], index: 2, kind: input, shape index: {}]   ;;  %s928_s3 = inlined_call_operand.vmem [shape: f32[2,3,256], index: 3, kind: output, shape index: {}]  }
   0x1 LB: > { %s649_s13 = sadd.s32 4294967295, %s813_s12   ;;  %p653_p0 = scmp.ge.s32.totalorder %s813_s12, 1  ;;  %s813_s12 = sphi %s837_s12, %s13_s12  }
   0x2   : > { %p137_p1 = scmp.lt.s32.totalorder %s813_s12, 3 }
   0x4   : > { %p138_p2 = pnand %p653_p0, %p137_p1 }
   0x5   : > { %p161_p3 = scmp.lt.s32.totalorder (!%p138_p2), %s649_s13, 1  ;;  %v172_v0 = vld [vmem:[%s926_s1] sm:$0xff] (!%p138_p2)  ;;  %v233_v1 = vlaneseq (!%p138_p2)  ;;  %v815_v2 = vmov (!%p138_p2), 1983009808   ;;  %v816_v6 = vmov (!%p138_p2), 0   ;;  %vm494_vm0 = vcmask (!%p138_p2), 64512  }
   0x6   : > { %141 = sbr.rel (%p138_p2) target bundleno = 313 (0x139), region = 32  ;;  %v231_v3 = vunpack.c.l.s4 (!%p138_p2), %v815_v2  ;;  %v222_v4 = vld [vmem:[%s927_s2] sm:$0x7] (!%p138_p2)  ;;  %727 = vset.pattern.permute.xlu0 (!%p138_p2), %v816_v6  ;;  %v229_v7 = vcombine.high (!%p138_p2), %v172_v0, %v172_v0  ;;  %vm498_vm1 = vcmask (!%p138_p2), 1043456  }
   0x7   : > { %v234_v5 = vshrl.u32 (!%p138_p2), %v233_v1, 7  ;;  %225 = vperm.xlu0 (!%p138_p2), %727, %v222_v4  }
   0x8   : > { %v232_v8 = vunpack.c.0.s8 (!%p138_p2), %v231_v3 }
   0xa   : > { %v235_v9 = vsub.s32 (!%p138_p2), %v232_v8, %v234_v5 }
   0xc   : > { %v860_v11 = vrot.slane (!%p138_p2), %v229_v7, %v235_v9  ;;  %v862_v12 = vrot.slane (!%p138_p2), %v172_v0, %v235_v9 }
   0xd   : > { %s930_s13 = smov (!%p161_p3, %s649_s13), 1 }
   0xe   : > { %s716_s18 = smul.u32 392, %s930_s13  ;;  %v245_v15 = vcombine.high %v860_v11, %v860_v11  ;;  %v244_v16 = vcombine.high %v862_v12, %v862_v12  ;;  %s711_s22 = sshll.u32 %s930_s13, 3 }
   0xf   : > { %s170_s25 = scalar_lea.vmem %s928_s3, %s711_s22 }
  0x10   : > { %s857_s21 = scalar_lea.vmem %s925_s0, %s716_s18  ;;  %708 = vmatprep.mubr.msk.bf16.mxu0 %vm494_vm0, %v245_v15  ;;  %537 = vmatprep.mubr.bf16.mxu1 %v244_v16 }
  0x11   : > { %v728_v10 = vld [vmem:[%s857_s21 + $0x4] ss:$8 sps:$4 sm:$0xff]   ;;  %v730_v13 = vld [vmem:[%s857_s21] ss:$8 sps:$4 sm:$0xff]   ;;  %v731_v14 = vld [vmem:[%s857_s21 + $0x14] ss:$8 sps:$4 sm:$0xff]  }
  0x12   : > { %505 = vmatprep.subr.bf16.mxu1 %v728_v10  ;;  %v733_v17 = vld [vmem:[%s857_s21 + $0x10] ss:$8 sps:$4 sm:$0xff]   ;;  %v734_v18 = vld [vmem:[%s857_s21 + $0x24] ss:$8 sps:$4 sm:$0xff]   ;;  %v736_v19 = vld [vmem:[%s857_s21 + $0x20] ss:$8 sps:$4 sm:$0xff]  }
  0x13   : > { %506 = vmatpush1.bf16.msra.mxu1 %v730_v13  ;;  %v737_v20 = vld [vmem:[%s857_s21 + $0x34] ss:$8 sps:$4 sm:$0xff]   ;;  %v749_v21 = vld [vmem:[%s857_s21 + $0x104] ss:$8 sps:$4 sm:$0xff]   ;;  %v739_v22 = vld [vmem:[%s857_s21 + $0x30] ss:$8 sps:$4 sm:$0xff]  }
  0x14   : > { %507 = vmatprep.subr.bf16.mxu1 %v731_v14  ;;  %v740_v23 = vld [vmem:[%s857_s21 + $0x44] ss:$8 sps:$4 sm:$0xff]   ;;  %v753_v24 = vld [vmem:[%s857_s21 + $0x100] ss:$8 sps:$4 sm:$0xff]   ;;  %546 = vmatprep.subr.bf16.mxu0 %v749_v21  ;;  %v755_v25 = vld [vmem:[%s857_s21 + $0x114] ss:$8 sps:$4 sm:$0xff]  }
  0x15   : > { %547 = vmatpush1.bf16.msra.mxu0 %v753_v24  ;;  %v742_v26 = vld [vmem:[%s857_s21 + $0x40] ss:$8 sps:$4 sm:$0xff]   ;;  %v759_v27 = vld [vmem:[%s857_s21 + $0x110] ss:$8 sps:$4 sm:$0xff]   ;;  %v761_v28 = vld [vmem:[%s857_s21 + $0x124] ss:$8 sps:$4 sm:$0xff]  }
  0x16   : > { %548 = vmatprep.subr.bf16.mxu0 %v755_v25  ;;  %v743_v29 = vld [vmem:[%s857_s21 + $0x54] ss:$8 sps:$4 sm:$0xff]   ;;  %v765_v30 = vld [vmem:[%s857_s21 + $0x120] ss:$8 sps:$4 sm:$0xff]   ;;  %v745_v32 = vld [vmem:[%s857_s21 + $0x50] ss:$8 sps:$4 sm:$0xff]  }
  0x17   : > { %508 = vmatpush1.bf16.msra.mxu1 %v733_v17  ;;  %v767_v31 = vld [vmem:[%s857_s21 + $0x134] ss:$8 sps:$4 sm:$0xff]   ;;  %v746_v33 = vld [vmem:[%s857_s21 + $0x64] ss:$8 sps:$4 sm:$0xff]   ;;  %v771_v34 = vld [vmem:[%s857_s21 + $0x130] ss:$8 sps:$4 sm:$0xff]  }
  0x18   : > { %509 = vmatprep.subr.bf16.mxu1 %v734_v18  ;;  %v773_v35 = vld [vmem:[%s857_s21 + $0x144] ss:$8 sps:$4 sm:$0xff]   ;;  %v748_v36 = vld [vmem:[%s857_s21 + $0x60] ss:$8 sps:$4 sm:$0xff]   ;;  %v751_v37 = vld [vmem:[%s857_s21 + $0x74] ss:$8 sps:$4 sm:$0xff]  }
  0x19   : > { %549 = vmatpush1.bf16.msra.mxu0 %v759_v27  ;;  %v777_v38 = vld [vmem:[%s857_s21 + $0x140] ss:$8 sps:$4 sm:$0xff]   ;;  %v779_v39 = vld [vmem:[%s857_s21 + $0x154] ss:$8 sps:$4 sm:$0xff]   ;;  %v754_v40 = vld [vmem:[%s857_s21 + $0x70] ss:$8 sps:$4 sm:$0xff]  }
  0x1a   : > { %550 = vmatprep.subr.bf16.mxu0 %v761_v28  ;;  %v757_v41 = vld [vmem:[%s857_s21 + $0x84] ss:$8 sps:$4 sm:$0xff]   ;;  %v783_v42 = vld [vmem:[%s857_s21 + $0x150] ss:$8 sps:$4 sm:$0xff]   ;;  %v760_v44 = vld [vmem:[%s857_s21 + $0x80] ss:$8 sps:$4 sm:$0xff]  }
  0x1b   : > { %510 = vmatpush1.bf16.msra.mxu1 %v736_v19  ;;  %v785_v43 = vld [vmem:[%s857_s21 + $0x164] ss:$8 sps:$4 sm:$0xff]   ;;  %v763_v45 = vld [vmem:[%s857_s21 + $0x94] ss:$8 sps:$4 sm:$0xff]   ;;  %v789_v46 = vld [vmem:[%s857_s21 + $0x160] ss:$8 sps:$4 sm:$0xff]  }
  0x1c   : > { %511 = vmatprep.subr.bf16.mxu1 %v737_v20  ;;  %v791_v47 = vld [vmem:[%s857_s21 + $0x174] ss:$8 sps:$4 sm:$0xff]   ;;  %v766_v48 = vld [vmem:[%s857_s21 + $0x90] ss:$8 sps:$4 sm:$0xff]   ;;  %v221_v49 = vld [vmem:[%s857_s21 + $0x180] sm:$0xff] }
  0x1d   : > { %551 = vmatpush1.bf16.msra.mxu0 %v765_v30  ;;  %v769_v50 = vld [vmem:[%s857_s21 + $0xa4] ss:$8 sps:$4 sm:$0xff]   ;;  %v795_v51 = vld [vmem:[%s857_s21 + $0x170] ss:$8 sps:$4 sm:$0xff]   ;;  %v706_v52 = vcombine.high %v221_v49, %v221_v49  ;;  %v705_v53 = vcombine.low %v221_v49, %v221_v49  ;;  %v772_v54 = vld [vmem:[%s857_s21 + $0xa0] ss:$8 sps:$4 sm:$0xff]  }
  0x1e   : > { %552 = vmatprep.subr.bf16.mxu0 %v767_v31  ;;  %v775_v55 = vld [vmem:[%s857_s21 + $0xb4] ss:$8 sps:$4 sm:$0xff]   ;;  %v778_v57 = vld [vmem:[%s857_s21 + $0xb0] ss:$8 sps:$4 sm:$0xff]   ;;  %v781_v58 = vld [vmem:[%s857_s21 + $0xc4] ss:$8 sps:$4 sm:$0xff]  }
  0x1f   : > { %512 = vmatpush1.bf16.msra.mxu1 %v739_v22  ;;  %v500_v56 = vsel %vm498_vm1, %v705_v53, 0  ;;  %v784_v59 = vld [vmem:[%s857_s21 + $0xc0] ss:$8 sps:$4 sm:$0xff]   ;;  %v787_v60 = vld [vmem:[%s857_s21 + $0xd4] ss:$8 sps:$4 sm:$0xff]  }
  0x20   : > { %513 = vmatprep.subr.bf16.mxu1 %v740_v23  ;;  %v790_v61 = vld [vmem:[%s857_s21 + $0xd0] ss:$8 sps:$4 sm:$0xff]   ;;  %v793_v62 = vld [vmem:[%s857_s21 + $0xe4] ss:$8 sps:$4 sm:$0xff]   ;;  %v796_v63 = vld [vmem:[%s857_s21 + $0xe0] ss:$8 sps:$4 sm:$0xff]  }
  0x21   : > { %553 = vmatpush1.bf16.msra.mxu0 %v771_v34  ;;  %v798_v0 = vld [vmem:[%s857_s21 + $0xf4] ss:$8 sps:$4 sm:$0xff]   ;;  %v801_v1 = vld [vmem:[%s857_s21 + $0xf0] ss:$8 sps:$4 sm:$0xff]  }
  0x22   : > { %554 = vmatprep.subr.bf16.mxu0 %v773_v35 }
  0x23   : > { %514 = vmatpush1.bf16.msra.mxu1 %v742_v26 }
  0x24   : > { %515 = vmatprep.subr.bf16.mxu1 %v743_v29 }
  0x25   : > { %555 = vmatpush1.bf16.msra.mxu0 %v777_v38 }
  0x26   : > { %556 = vmatprep.subr.bf16.mxu0 %v779_v39 }
  0x27   : > { %516 = vmatpush1.bf16.msra.mxu1 %v745_v32 }
  0x28   : > { %517 = vmatprep.subr.bf16.mxu1 %v746_v33 }
  0x29   : > { %557 = vmatpush1.bf16.msra.mxu0 %v783_v42 }
  0x2a   : > { %558 = vmatprep.subr.bf16.mxu0 %v785_v43 }
  0x2b   : > { %518 = vmatpush1.bf16.msra.mxu1 %v748_v36 }
  0x2c   : > { %519 = vmatprep.subr.bf16.mxu1 %v751_v37 }
  0x2d   : > { %559 = vmatpush1.bf16.msra.mxu0 %v789_v46 }
  0x2e   : > { %560 = vmatprep.subr.bf16.mxu0 %v791_v47 }
  0x2f   : > { %520 = vmatpush1.bf16.msra.mxu1 %v754_v40 }
  0x30   : > { %521 = vmatprep.subr.bf16.mxu1 %v757_v41 }
  0x31   : > { %561 = vmatpush1.bf16.msra.mxu0 %v795_v51 }
  0x32   : > { %707 = vmatprep.subr.msk.bf16.mxu0 %vm498_vm1, %v706_v52 }
  0x33   : > { %522 = vmatpush1.bf16.msra.mxu1 %v760_v44 }
  0x34   : > { %523 = vmatprep.subr.bf16.mxu1 %v763_v45 }
  0x35   : > { %563 = vmatpush1.bf16.msra.mxu0 %v500_v56 }
  0x37   : > { %524 = vmatpush1.bf16.msra.mxu1 %v766_v48 }
  0x38   : > { %525 = vmatprep.subr.bf16.mxu1 %v769_v50  ;;  %579 = vmatmul.mubr.bf16.vlgmr.msra.gmra.mrb[0].mxu0 %v860_v11 }
  0x3b   : > { %526 = vmatpush1.bf16.msra.mxu1 %v772_v54 }
  0x3c   : > { %527 = vmatprep.subr.bf16.mxu1 %v775_v55 }
  0x3f   : > { %528 = vmatpush1.bf16.msra.mxu1 %v778_v57 }
  0x40   : > { %529 = vmatprep.subr.bf16.mxu1 %v781_v58 }
  0x43   : > { %530 = vmatpush1.bf16.msra.mxu1 %v784_v59 }
  0x44   : > { %531 = vmatprep.subr.bf16.mxu1 %v787_v60 }
  0x47   : > { %532 = vmatpush1.bf16.msra.mxu1 %v790_v61 }
  0x48   : > { %533 = vmatprep.subr.bf16.mxu1 %v793_v62 }
  0x4b   : > { %534 = vmatpush1.bf16.msra.mxu1 %v796_v63 }
  0x4c   : > { %535 = vmatprep.subr.bf16.mxu1 %v798_v0 }
  0x4f   : > { %536 = vmatpush1.bf16.msra.mxu1 %v801_v1 }
  0x52   : > { %538 = vmatmul.mubr.bf16.vlgmr.msra.gmra.mrb[0].mxu1 %v862_v12 }
  0x86   : > { %v226_v6 = vpop.permute.xlu0 %225 }
 0x10b   : > { %v580_v2 = vpop.f32.mrb[0].mxu0 }
 0x10c   : > { %v582_v3 = vpop.f32.mrb[1].mxu0 }
 0x10d   : > { %v584_v4 = vpop.f32.mrb[2].mxu0 }
 0x10e   : > { %v585_v5 = vpop.f32.mrb[3].mxu0 }
 0x125   : > { %v539_v7 = vpop.f32.mrb[0].mxu1 }
 0x126   : > { %v540_v8 = vadd.f32 %v539_v7, %v226_v6  ;;  %v541_v9 = vpop.f32.mrb[1].mxu1 }
 0x127   : > { %v542_v10 = vadd.f32 %v541_v9, %v226_v6  ;;  %v543_v11 = vpop.f32.mrb[2].mxu1 }
 0x128   : > { %v581_v13 = vadd.f32 %v580_v2, %v540_v8  ;;  %v544_v14 = vpop.f32.mrb[3].mxu1 }
 0x129   : > { %v583_v15 = vadd.f32 %v582_v3, %v542_v10 }
 0x12a   : > { %803 = vtanh.f32 %v581_v13 }
 0x12b   : > { %805 = vtanh.f32 %v583_v15 }
 0x134   : > { %v804_v16 = vpop.eup %803 }
 0x135   : > { %v806_v17 = vpop.eup %805 }
 0x136   : > { %v591_v12 = vcombine.low %v804_v16, %v806_v17 }
 0x138   : > { %593 = vst [vmem:[%s170_s25] sm:$0x77] %v591_v12 }
 0x139 PF: > { %s13_s12 = sadd.s32 1, %s813_s12  }
 0x13a   : > { %p10_p4 = scmp.ge.s32.totalorder %s13_s12, 4  }
 0x13c   :  { %12 = sbr.rel (!%p10_p4) target bundleno = 1 (0x1), region = 62 }

</bundles_post_ra>
